<compile_context>
chip_gen: v7x
topology: tpu7x:2x2x1
jax: 0.10.0
libtpu: 0.0.40
codegen_flags: <defaults>
</compile_context>

<pallas_src>
import jax
import jax.numpy as jnp
from jax import lax
from jax.experimental import pallas as pl
from jax.experimental.pallas import tpu as pltpu

NEG = -1e30  # "minus infinity" for masking padded tags (finite to avoid inf/nan paths)


def _round_up(n, m):
    return ((n + m - 1) // m) * m


def _time_chunk(T, max_chunk=8):
    """Largest divisor of T that is <= max_chunk (timesteps per grid step)."""
    for c in range(min(max_chunk, T), 0, -1):
        if T % c == 0:
            return c
    return 1


# ----------------------------- row-tiled Linear (bf16 MXU, f32 accumulate) ---------------
def _linear_kernel(x_ref, w_ref, b_ref, o_ref):
    o_ref[...] = (jnp.dot(x_ref[...], w_ref[...], preferred_element_type=jnp.float32)
                  + b_ref[...])


def linear(x2d, w, b, *, tile_n=512):
    """x2d: (N, H); w: (K, H); b: (K,)  ->  (N, K) f32.  Row-tiled, bf16 operands."""
    N, H = x2d.shape
    K = w.shape[0]
    tn = min(tile_n, _round_up(N, 8))
    Np = _round_up(N, tn)
    xp = x2d.astype(jnp.bfloat16)
    if Np != N:
        xp = jnp.pad(xp, ((0, Np - N), (0, 0)))
    out = pl.pallas_call(
        _linear_kernel,
        out_shape=jax.ShapeDtypeStruct((Np, K), jnp.float32),
        grid=(Np // tn,),
        in_specs=[pl.BlockSpec((tn, H), lambda i: (i, 0)),
                  pl.BlockSpec((H, K), lambda i: (0, 0)),
                  pl.BlockSpec((1, K), lambda i: (0, 0))],
        out_specs=pl.BlockSpec((tn, K), lambda i: (i, 0)),
        compiler_params=pltpu.CompilerParams(dimension_semantics=("parallel",)),
    )(xp, w.T.astype(jnp.bfloat16), b[None, :].astype(jnp.float32))
    return out[:N]


# ----------------------------- BiLSTM (both directions, chunked timesteps) ----------------
def _lstm_kernel(gx_ref, whh_ref, out_ref, h_ref, c_ref):
    # grid = (direction, time_chunk); h/c scratch carried across the time axis.
    @pl.when(pl.program_id(1) == 0)
    def _():
        h_ref[...] = jnp.zeros_like(h_ref)
        c_ref[...] = jnp.zeros_like(c_ref)

    hh = h_ref.shape[1]
    whh = whh_ref[0]                                   # (Hh, 4*Hh) bf16, loaded once per chunk
    Tc = gx_ref.shape[1]
    for i in range(Tc):                                # unrolled straight-line chunk
        # input projection + biases were precomputed (hoisted); only the recurrent matmul here
        gates = gx_ref[0, i] + jnp.dot(h_ref[...].astype(whh.dtype), whh,
                                       preferred_element_type=jnp.float32)   # (B, 4*Hh)
        i_g = jax.nn.sigmoid(gates[:, 0 * hh:1 * hh])
        f_g = jax.nn.sigmoid(gates[:, 1 * hh:2 * hh])
        g_g = jnp.tanh(gates[:, 2 * hh:3 * hh])
        o_g = jax.nn.sigmoid(gates[:, 3 * hh:4 * hh])
        c = f_g * c_ref[...] + i_g * g_g
        h = o_g * jnp.tanh(c)
        c_ref[...] = c
        h_ref[...] = h
        out_ref[0, i] = h


def bilstm(gx_stack, whh_stack):
    """gx_stack: (2, T, B, 4*Hh) precomputed input gates (dir 1 already time-reversed);
       whh_stack: (2, Hh, 4*Hh) bf16.  Returns (2, T, B, Hh) f32 hidden states."""
    _, T, B, G4 = gx_stack.shape
    Hh = G4 // 4
    Tc = _time_chunk(T)
    return pl.pallas_call(
        _lstm_kernel,
        out_shape=jax.ShapeDtypeStruct((2, T, B, Hh), jnp.float32),
        grid=(2, T // Tc),
        in_specs=[pl.BlockSpec((1, Tc, B, G4), lambda d, t: (d, t, 0, 0)),
                  pl.BlockSpec((1, Hh, G4), lambda d, t: (d, 0, 0))],
        out_specs=pl.BlockSpec((1, Tc, B, Hh), lambda d, t: (d, t, 0, 0)),
        scratch_shapes=[pltpu.VMEM((B, Hh), jnp.float32),
                        pltpu.VMEM((B, Hh), jnp.float32)],
        compiler_params=pltpu.CompilerParams(
            dimension_semantics=("parallel", "arbitrary")),   # directions -> 2 TCs on v7x
    )(gx_stack, whh_stack)


# ----------------------------- CRF partition function (chunked timesteps) ----------------
def _crf_norm_kernel(em_ref, exptr_ref, start_ref, end_ref, out_ref, alpha_ref):
    g = pl.program_id(0)
    Tc = em_ref.shape[0]

    def recurrence(em_t):
        alpha = alpha_ref[...]
        m = jnp.max(alpha, axis=1, keepdims=True)
        p = jnp.exp(alpha - m)
        # logsumexp_i(alpha[b,i] + trans[i,j]) = m_b + tmax + log((exp(alpha-m) @ exp(trans-tmax))[b,j])
        # exp(trans - tmax) is precomputed in the wrapper; the tmax shift is added back there.
        s = jnp.dot(p, exptr_ref[...], preferred_element_type=jnp.float32)
        alpha_ref[...] = jnp.maximum(m + jnp.log(s), NEG) + em_t

    for i in range(Tc):                                # unrolled straight-line chunk
        em_t = em_ref[i]
        if i == 0:
            @pl.when(g == 0)
            def _():
                alpha_ref[...] = start_ref[...] + em_t

            @pl.when(g > 0)
            def _():
                recurrence(em_t)
        else:
            recurrence(em_t)

    @pl.when(g == pl.num_programs(0) - 1)
    def _():
        sc = alpha_ref[...] + end_ref[...]
        m = jnp.max(sc, axis=1, keepdims=True)
        out_ref[...] = m + jnp.log(jnp.sum(jnp.exp(sc - m), axis=1, keepdims=True))


def crf_normalizer(emissions_p, exp_trans_p, start_p, end_p):
    """emissions_p: (T, B, Kp) with Kp lane-padded; padded tags masked via NEG in start/end/trans."""
    T, B, Kp = emissions_p.shape
    Tc = _time_chunk(T)
    out = pl.pallas_call(
        _crf_norm_kernel,
        out_shape=jax.ShapeDtypeStruct((B, 1), jnp.float32),
        grid=(T // Tc,),
        in_specs=[pl.BlockSpec((Tc, B, Kp), lambda t: (t, 0, 0)),
                  pl.BlockSpec((Kp, Kp), lambda t: (0, 0)),
                  pl.BlockSpec((1, Kp), lambda t: (0, 0)),
                  pl.BlockSpec((1, Kp), lambda t: (0, 0))],
        out_specs=pl.BlockSpec((B, 1), lambda t: (0, 0)),
        scratch_shapes=[pltpu.VMEM((B, Kp), jnp.float32)],
        compiler_params=pltpu.CompilerParams(dimension_semantics=("arbitrary",)),
    )(emissions_p, exp_trans_p, start_p[None, :], end_p[None, :])
    return out[:, 0]


# ----------------------------- CRF gold score & Viterbi (plain JAX glue) -----------------
def crf_score(emissions, tags, start, end, trans):
    """torchcrf _compute_score with mask == ones (vectorized).  emissions (T,B,K), tags (T,B)."""
    em_sc = jnp.take_along_axis(emissions, tags[:, :, None], axis=2)[..., 0]   # (T, B)
    tr_sc = trans[tags[:-1], tags[1:]]                                         # (T-1, B)
    return start[tags[0]] + em_sc.sum(axis=0) + tr_sc.sum(axis=0) + end[tags[-1]]


def viterbi_decode(emissions, start, end, trans):
    """torchcrf _viterbi_decode with mask == ones.  -> (B, T) int32."""
    T, B, K = emissions.shape
    score0 = start[None, :] + emissions[0]

    def fwd(score, em_t):
        nxt = score[:, :, None] + trans[None, :, :] + em_t[:, None, :]         # (B, K, K)
        return jnp.max(nxt, axis=1), jnp.argmax(nxt, axis=1)

    score, history = lax.scan(fwd, score0, emissions[1:])                      # (T-1, B, K)
    score = score + end[None, :]
    last_tag = jnp.argmax(score, axis=1)                                       # (B,)
    batch_idx = jnp.arange(B)

    def back(tag, hist):
        return hist[batch_idx, tag], tag

    first_tag, rest = lax.scan(back, last_tag, history, reverse=True)
    tags = jnp.concatenate([first_tag[None, :], rest], axis=0)                 # (T, B)
    return tags.T.astype(jnp.int32)                                            # (B, T)


# ----------------------------- full lstmCrf forward -----------------------------
def lstm_crf_forward(params, src, label):
    B, T = src.shape
    H = params["emb"].shape[1]
    Hh = params["w_hh_f"].shape[1]
    K = params["w_out"].shape[0]
    Kp = _round_up(K, 128)                            # lane-dense tag dimension

    # TODO(synk): WordEmbedding internals (pos-emb / LayerNorm) are not defined in the
    # reference snippet; implemented as a plain token-embedding lookup.
    emb = params["emb"][src]                          # (B, T, H)
    x = jnp.transpose(emb, (1, 0, 2))                 # (T, B, H) time-major
    x2d = x.reshape(T * B, H)

    # ---- hoisted input projection for BOTH directions: one big MXU matmul ----
    w_ih_cat = jnp.concatenate([params["w_ih_f"], params["w_ih_b"]], axis=0)   # (8*Hh, H)
    b_cat = jnp.concatenate([params["b_ih_f"] + params["b_hh_f"],
                             params["b_ih_b"] + params["b_hh_b"]], axis=0)     # (8*Hh,)
    gates_x = linear(x2d, w_ih_cat, b_cat).reshape(T, B, 8 * Hh)
    gx_f = gates_x[:, :, :4 * Hh]
    gx_b = gates_x[:, :, 4 * Hh:][::-1]               # backward dir consumes reversed time
    gx_stack = jnp.stack([gx_f, gx_b], axis=0)        # (2, T, B, 4*Hh)
    whh_stack = jnp.stack([params["w_hh_f"].T, params["w_hh_b"].T],
                          axis=0).astype(jnp.bfloat16)

    out_stack = bilstm(gx_stack, whh_stack)           # (2, T, B, Hh)
    out = jnp.concatenate([out_stack[0], out_stack[1][::-1]], axis=-1)         # (T, B, H)

    # dropout_layer: identity (deterministic eval semantics)

    # ---- output projection, lane-dense K padded to 128 ----
    w_out_p = jnp.zeros((Kp, H), jnp.float32).at[:K, :].set(params["w_out"])
    b_out_p = jnp.zeros((Kp,), jnp.float32).at[:K].set(params["b_out"])
    emissions_p = linear(out.reshape(T * B, H), w_out_p, b_out_p).reshape(T, B, Kp)
    emissions = emissions_p[:, :, :K]                 # real tags only, for score/decode

    trans, start, end = params["trans"], params["start"], params["end"]
    label_t = label.T                                 # (T, B), like label.transpose(0,1)
    numerator = crf_score(emissions, label_t, start, end, trans)

    # ---- CRF partition function (padded tags masked with NEG, trans max-stabilized) ----
    tmax = jnp.max(trans)
    trans_p = jnp.full((Kp, Kp), NEG, jnp.float32).at[:K, :K].set(trans)
    start_p = jnp.full((Kp,), NEG, jnp.float32).at[:K].set(start)
    end_p = jnp.full((Kp,), NEG, jnp.float32).at[:K].set(end)
    exp_trans_p = jnp.exp(trans_p - tmax)             # computed once; padded rows/cols -> 0
    log_z = crf_normalizer(emissions_p, exp_trans_p, start_p, end_p) + (T - 1) * tmax

    llh = jnp.sum(numerator - log_z)                  # torchcrf reduction='sum'
    loss = -llh / B

    predict = viterbi_decode(emissions, start, end, trans)
    label_flat = label.reshape(-1)
    predict_flat = predict.reshape(-1)
    label_mask = (label_flat > 0)
    predict_flat = predict_flat * label_mask.astype(jnp.int32)
    correct = jnp.sum((predict_flat == label_flat).astype(jnp.float32))
    return loss, correct, predict_flat, label_flat


# ----------------------------- demo -----------------------------
if __name__ == "__main__":
    key = jax.random.PRNGKey(0)
    B, T, H, K, V = 2, 8, 32, 9, 50          # batch, seq, hidden, tagset, vocab
    Hh = H // 2
    keys = jax.random.split(key, 16)

    def u(k, shape, s=0.1):
        return jax.random.uniform(k, shape, jnp.float32, -s, s)

    params = {
        "emb":    0.1 * jax.random.normal(keys[0], (V, H), jnp.float32),
        "w_ih_f": u(keys[1], (4 * Hh, H)),  "w_hh_f": u(keys[2], (4 * Hh, Hh)),
        "b_ih_f": u(keys[3], (4 * Hh,)),    "b_hh_f": u(keys[4], (4 * Hh,)),
        "w_ih_b": u(keys[5], (4 * Hh, H)),  "w_hh_b": u(keys[6], (4 * Hh, Hh)),
        "b_ih_b": u(keys[7], (4 * Hh,)),    "b_hh_b": u(keys[8], (4 * Hh,)),
        "w_out":  u(keys[9], (K, H)),       "b_out":  u(keys[10], (K,)),
        "trans":  u(keys[11], (K, K)),      "start":  u(keys[12], (K,)),
        "end":    u(keys[13], (K,)),
    }
    src = jax.random.randint(keys[14], (B, T), 1, V)
    label = jax.random.randint(keys[15], (B, T), 0, K)

    loss, correct, predict, gold = jax.jit(lstm_crf_forward)(params, src, label)
    jax.block_until_ready((loss, correct, predict, gold))
    print("KERNEL_OK")
</pallas_src>

<mosaic_0001>
module attributes {stable_mosaic.version = 11 : i64} {
  func.func @_lstm_kernel(%arg0: i32, %arg1: i32, %arg2: memref<1x8x2x64xf32, #tpu.memory_space<vmem>>, %arg3: memref<1x16x64xbf16, #tpu.memory_space<vmem>>, %arg4: memref<1x8x2x16xf32, #tpu.memory_space<vmem>>, %arg5: memref<2x16xf32, #tpu.memory_space<vmem>>, %arg6: memref<2x16xf32, #tpu.memory_space<vmem>>) attributes {dimension_semantics = [#tpu.dimension_semantics<parallel>, #tpu.dimension_semantics<arbitrary>], iteration_bounds = array<i64: 2, 1>, scalar_prefetch = 0 : i64, scratch_operands = 2 : i64, tpu.core_type = #tpu.core_type<tc>, window_params = [{transform_indices = @transform_0, window_bounds = array<i64: 1, 8, 2, 64>}, {transform_indices = @transform_1, window_bounds = array<i64: 1, 16, 64>}, {transform_indices = @transform_2, window_bounds = array<i64: 1, 8, 2, 16>}]} {
    %c0_i32 = arith.constant 0 : i32
    %0 = arith.cmpi eq, %arg1, %c0_i32 : i32
    %1 = arith.extui %0 : i1 to i32
    %c0_i32_0 = arith.constant 0 : i32
    %2 = arith.cmpi ne, %1, %c0_i32_0 : i32
    scf.if %2 {
      %cst_155 = arith.constant 0.000000e+00 : f32
      %301 = vector.broadcast %cst_155 : f32 to vector<2x16xf32>
      %c0_156 = arith.constant 0 : index
      %c0_157 = arith.constant 0 : index
      %302 = vector.load %arg5[%c0_156, %c0_157] : memref<2x16xf32, #tpu.memory_space<vmem>>, vector<2x16xf32>
      tpu.vector_store %arg5[%c0_156, %c0_157], %301 {strides = array<i32>} : memref<2x16xf32, #tpu.memory_space<vmem>>, vector<2x16xf32>,
      %cst_158 = arith.constant 0.000000e+00 : f32
      %303 = vector.broadcast %cst_158 : f32 to vector<2x16xf32>
      %c0_159 = arith.constant 0 : index
      %c0_160 = arith.constant 0 : index
      %304 = vector.load %arg6[%c0_159, %c0_160] : memref<2x16xf32, #tpu.memory_space<vmem>>, vector<2x16xf32>
      tpu.vector_store %arg6[%c0_159, %c0_160], %303 {strides = array<i32>} : memref<2x16xf32, #tpu.memory_space<vmem>>, vector<2x16xf32>,
    } else {
    }
    %c0 = arith.constant 0 : index
    %c0_1 = arith.constant 0 : index
    %c0_2 = arith.constant 0 : index
    %3 = vector.load %arg3[%c0, %c0_1, %c0_2] : memref<1x16x64xbf16, #tpu.memory_space<vmem>>, vector<1x16x64xbf16>
    %4 = vector.shape_cast %3 : vector<1x16x64xbf16> to vector<16x64xbf16>
    %c0_3 = arith.constant 0 : index
    %c0_4 = arith.constant 0 : index
    %c0_5 = arith.constant 0 : index
    %c0_6 = arith.constant 0 : index
    %5 = vector.load %arg2[%c0_3, %c0_4, %c0_5, %c0_6] : memref<1x8x2x64xf32, #tpu.memory_space<vmem>>, vector<1x1x2x64xf32>
    %6 = vector.shape_cast %5 : vector<1x1x2x64xf32> to vector<2x64xf32>
    %c0_7 = arith.constant 0 : index
    %c0_8 = arith.constant 0 : index
    %7 = vector.load %arg5[%c0_7, %c0_8] : memref<2x16xf32, #tpu.memory_space<vmem>>, vector<2x16xf32>
    %8 = arith.truncf %7 : vector<2x16xf32> to vector<2x16xbf16>
    %cst = arith.constant dense<0.000000e+00> : vector<2x64xf32>
    %9 = tpu.matmul %8, %4, %cst {dimension_numbers = #tpu.dot_dimension_numbers<[1], [0], [0], [1], [0, 0, 1, 1], [], []>} : vector<2x16xbf16>, vector<16x64xbf16>, vector<2x64xf32> -> vector<2x64xf32>
    %10 = arith.addf %6, %9 : vector<2x64xf32>
    %11 = vector.extract_strided_slice %10 {offsets = [0, 0], sizes = [2, 16], strides = [1, 1]} : vector<2x64xf32> to vector<2x16xf32>
    %12 = arith.negf %11 : vector<2x16xf32>
    %13 = math.exp %12 : vector<2x16xf32>
    %cst_9 = arith.constant 1.000000e+00 : f32
    %14 = vector.broadcast %cst_9 : f32 to vector<2x16xf32>
    %15 = arith.addf %14, %13 : vector<2x16xf32>
    %16 = arith.divf %14, %15 : vector<2x16xf32>
    %17 = vector.extract_strided_slice %10 {offsets = [0, 16], sizes = [2, 16], strides = [1, 1]} : vector<2x64xf32> to vector<2x16xf32>
    %18 = arith.negf %17 : vector<2x16xf32>
    %19 = math.exp %18 : vector<2x16xf32>
    %cst_10 = arith.constant 1.000000e+00 : f32
    %20 = vector.broadcast %cst_10 : f32 to vector<2x16xf32>
    %21 = arith.addf %20, %19 : vector<2x16xf32>
    %22 = arith.divf %20, %21 : vector<2x16xf32>
    %23 = vector.extract_strided_slice %10 {offsets = [0, 32], sizes = [2, 16], strides = [1, 1]} : vector<2x64xf32> to vector<2x16xf32>
    %24 = math.tanh %23 : vector<2x16xf32>
    %25 = vector.extract_strided_slice %10 {offsets = [0, 48], sizes = [2, 16], strides = [1, 1]} : vector<2x64xf32> to vector<2x16xf32>
    %26 = arith.negf %25 : vector<2x16xf32>
    %27 = math.exp %26 : vector<2x16xf32>
    %cst_11 = arith.constant 1.000000e+00 : f32
    %28 = vector.broadcast %cst_11 : f32 to vector<2x16xf32>
    %29 = arith.addf %28, %27 : vector<2x16xf32>
    %30 = arith.divf %28, %29 : vector<2x16xf32>
    %c0_12 = arith.constant 0 : index
    %c0_13 = arith.constant 0 : index
    %31 = vector.load %arg6[%c0_12, %c0_13] : memref<2x16xf32, #tpu.memory_space<vmem>>, vector<2x16xf32>
    %32 = arith.mulf %22, %31 : vector<2x16xf32>
    %33 = arith.mulf %16, %24 : vector<2x16xf32>
    %34 = arith.addf %32, %33 : vector<2x16xf32>
    %35 = math.tanh %34 : vector<2x16xf32>
    %36 = arith.mulf %30, %35 : vector<2x16xf32>
    %c0_14 = arith.constant 0 : index
    %c0_15 = arith.constant 0 : index
    %37 = vector.load %arg6[%c0_14, %c0_15] : memref<2x16xf32, #tpu.memory_space<vmem>>, vector<2x16xf32>
    tpu.vector_store %arg6[%c0_14, %c0_15], %34 {strides = array<i32>} : memref<2x16xf32, #tpu.memory_space<vmem>>, vector<2x16xf32>,
    %c0_16 = arith.constant 0 : index
    %c0_17 = arith.constant 0 : index
    %38 = vector.load %arg5[%c0_16, %c0_17] : memref<2x16xf32, #tpu.memory_space<vmem>>, vector<2x16xf32>
    tpu.vector_store %arg5[%c0_16, %c0_17], %36 {strides = array<i32>} : memref<2x16xf32, #tpu.memory_space<vmem>>, vector<2x16xf32>,
    %c0_18 = arith.constant 0 : index
    %c0_19 = arith.constant 0 : index
    %c0_20 = arith.constant 0 : index
    %c0_21 = arith.constant 0 : index
    %39 = vector.load %arg4[%c0_18, %c0_19, %c0_20, %c0_21] : memref<1x8x2x16xf32, #tpu.memory_space<vmem>>, vector<1x1x2x16xf32>
    %40 = vector.shape_cast %39 : vector<1x1x2x16xf32> to vector<2x16xf32>
    %41 = vector.shape_cast %36 : vector<2x16xf32> to vector<1x1x2x16xf32>
    tpu.vector_store %arg4[%c0_18, %c0_19, %c0_20, %c0_21], %41 {strides = array<i32>} : memref<1x8x2x16xf32, #tpu.memory_space<vmem>>, vector<1x1x2x16xf32>,
    %c0_22 = arith.constant 0 : index
    %c1 = arith.constant 1 : index
    %c0_23 = arith.constant 0 : index
    %c0_24 = arith.constant 0 : index
    %42 = vector.load %arg2[%c0_22, %c1, %c0_23, %c0_24] : memref<1x8x2x64xf32, #tpu.memory_space<vmem>>, vector<1x1x2x64xf32>
    %43 = vector.shape_cast %42 : vector<1x1x2x64xf32> to vector<2x64xf32>
    %c0_25 = arith.constant 0 : index
    %c0_26 = arith.constant 0 : index
    %44 = vector.load %arg5[%c0_25, %c0_26] : memref<2x16xf32, #tpu.memory_space<vmem>>, vector<2x16xf32>
    %45 = arith.truncf %44 : vector<2x16xf32> to vector<2x16xbf16>
    %cst_27 = arith.constant dense<0.000000e+00> : vector<2x64xf32>
    %46 = tpu.matmul %45, %4, %cst_27 {dimension_numbers = #tpu.dot_dimension_numbers<[1], [0], [0], [1], [0, 0, 1, 1], [], []>} : vector<2x16xbf16>, vector<16x64xbf16>, vector<2x64xf32> -> vector<2x64xf32>
    %47 = arith.addf %43, %46 : vector<2x64xf32>
    %48 = vector.extract_strided_slice %47 {offsets = [0, 0], sizes = [2, 16], strides = [1, 1]} : vector<2x64xf32> to vector<2x16xf32>
    %49 = arith.negf %48 : vector<2x16xf32>
    %50 = math.exp %49 : vector<2x16xf32>
    %cst_28 = arith.constant 1.000000e+00 : f32
    %51 = vector.broadcast %cst_28 : f32 to vector<2x16xf32>
    %52 = arith.addf %51, %50 : vector<2x16xf32>
    %53 = arith.divf %51, %52 : vector<2x16xf32>
    %54 = vector.extract_strided_slice %47 {offsets = [0, 16], sizes = [2, 16], strides = [1, 1]} : vector<2x64xf32> to vector<2x16xf32>
    %55 = arith.negf %54 : vector<2x16xf32>
    %56 = math.exp %55 : vector<2x16xf32>
    %cst_29 = arith.constant 1.000000e+00 : f32
    %57 = vector.broadcast %cst_29 : f32 to vector<2x16xf32>
    %58 = arith.addf %57, %56 : vector<2x16xf32>
    %59 = arith.divf %57, %58 : vector<2x16xf32>
    %60 = vector.extract_strided_slice %47 {offsets = [0, 32], sizes = [2, 16], strides = [1, 1]} : vector<2x64xf32> to vector<2x16xf32>
    %61 = math.tanh %60 : vector<2x16xf32>
    %62 = vector.extract_strided_slice %47 {offsets = [0, 48], sizes = [2, 16], strides = [1, 1]} : vector<2x64xf32> to vector<2x16xf32>
    %63 = arith.negf %62 : vector<2x16xf32>
    %64 = math.exp %63 : vector<2x16xf32>
    %cst_30 = arith.constant 1.000000e+00 : f32
    %65 = vector.broadcast %cst_30 : f32 to vector<2x16xf32>
    %66 = arith.addf %65, %64 : vector<2x16xf32>
    %67 = arith.divf %65, %66 : vector<2x16xf32>
    %c0_31 = arith.constant 0 : index
    %c0_32 = arith.constant 0 : index
    %68 = vector.load %arg6[%c0_31, %c0_32] : memref<2x16xf32, #tpu.memory_space<vmem>>, vector<2x16xf32>
    %69 = arith.mulf %59, %68 : vector<2x16xf32>
    %70 = arith.mulf %53, %61 : vector<2x16xf32>
    %71 = arith.addf %69, %70 : vector<2x16xf32>
    %72 = math.tanh %71 : vector<2x16xf32>
    %73 = arith.mulf %67, %72 : vector<2x16xf32>
    %c0_33 = arith.constant 0 : index
    %c0_34 = arith.constant 0 : index
    %74 = vector.load %arg6[%c0_33, %c0_34] : memref<2x16xf32, #tpu.memory_space<vmem>>, vector<2x16xf32>
    tpu.vector_store %arg6[%c0_33, %c0_34], %71 {strides = array<i32>} : memref<2x16xf32, #tpu.memory_space<vmem>>, vector<2x16xf32>,
    %c0_35 = arith.constant 0 : index
    %c0_36 = arith.constant 0 : index
    %75 = vector.load %arg5[%c0_35, %c0_36] : memref<2x16xf32, #tpu.memory_space<vmem>>, vector<2x16xf32>
    tpu.vector_store %arg5[%c0_35, %c0_36], %73 {strides = array<i32>} : memref<2x16xf32, #tpu.memory_space<vmem>>, vector<2x16xf32>,
    %c0_37 = arith.constant 0 : index
    %c1_38 = arith.constant 1 : index
    %c0_39 = arith.constant 0 : index
    %c0_40 = arith.constant 0 : index
    %76 = vector.load %arg4[%c0_37, %c1_38, %c0_39, %c0_40] : memref<1x8x2x16xf32, #tpu.memory_space<vmem>>, vector<1x1x2x16xf32>
    %77 = vector.shape_cast %76 : vector<1x1x2x16xf32> to vector<2x16xf32>
    %78 = vector.shape_cast %73 : vector<2x16xf32> to vector<1x1x2x16xf32>
    tpu.vector_store %arg4[%c0_37, %c1_38, %c0_39, %c0_40], %78 {strides = array<i32>} : memref<1x8x2x16xf32, #tpu.memory_space<vmem>>, vector<1x1x2x16xf32>,
    %c0_41 = arith.constant 0 : index
    %c2 = arith.constant 2 : index
    %c0_42 = arith.constant 0 : index
    %c0_43 = arith.constant 0 : index
    %79 = vector.load %arg2[%c0_41, %c2, %c0_42, %c0_43] : memref<1x8x2x64xf32, #tpu.memory_space<vmem>>, vector<1x1x2x64xf32>
    %80 = vector.shape_cast %79 : vector<1x1x2x64xf32> to vector<2x64xf32>
    %c0_44 = arith.constant 0 : index
    %c0_45 = arith.constant 0 : index
    %81 = vector.load %arg5[%c0_44, %c0_45] : memref<2x16xf32, #tpu.memory_space<vmem>>, vector<2x16xf32>
    %82 = arith.truncf %81 : vector<2x16xf32> to vector<2x16xbf16>
    %cst_46 = arith.constant dense<0.000000e+00> : vector<2x64xf32>
    %83 = tpu.matmul %82, %4, %cst_46 {dimension_numbers = #tpu.dot_dimension_numbers<[1], [0], [0], [1], [0, 0, 1, 1], [], []>} : vector<2x16xbf16>, vector<16x64xbf16>, vector<2x64xf32> -> vector<2x64xf32>
    %84 = arith.addf %80, %83 : vector<2x64xf32>
    %85 = vector.extract_strided_slice %84 {offsets = [0, 0], sizes = [2, 16], strides = [1, 1]} : vector<2x64xf32> to vector<2x16xf32>
    %86 = arith.negf %85 : vector<2x16xf32>
    %87 = math.exp %86 : vector<2x16xf32>
    %cst_47 = arith.constant 1.000000e+00 : f32
    %88 = vector.broadcast %cst_47 : f32 to vector<2x16xf32>
    %89 = arith.addf %88, %87 : vector<2x16xf32>
    %90 = arith.divf %88, %89 : vector<2x16xf32>
    %91 = vector.extract_strided_slice %84 {offsets = [0, 16], sizes = [2, 16], strides = [1, 1]} : vector<2x64xf32> to vector<2x16xf32>
    %92 = arith.negf %91 : vector<2x16xf32>
    %93 = math.exp %92 : vector<2x16xf32>
    %cst_48 = arith.constant 1.000000e+00 : f32
    %94 = vector.broadcast %cst_48 : f32 to vector<2x16xf32>
    %95 = arith.addf %94, %93 : vector<2x16xf32>
    %96 = arith.divf %94, %95 : vector<2x16xf32>
    %97 = vector.extract_strided_slice %84 {offsets = [0, 32], sizes = [2, 16], strides = [1, 1]} : vector<2x64xf32> to vector<2x16xf32>
    %98 = math.tanh %97 : vector<2x16xf32>
    %99 = vector.extract_strided_slice %84 {offsets = [0, 48], sizes = [2, 16], strides = [1, 1]} : vector<2x64xf32> to vector<2x16xf32>
    %100 = arith.negf %99 : vector<2x16xf32>
    %101 = math.exp %100 : vector<2x16xf32>
    %cst_49 = arith.constant 1.000000e+00 : f32
    %102 = vector.broadcast %cst_49 : f32 to vector<2x16xf32>
    %103 = arith.addf %102, %101 : vector<2x16xf32>
    %104 = arith.divf %102, %103 : vector<2x16xf32>
    %c0_50 = arith.constant 0 : index
    %c0_51 = arith.constant 0 : index
    %105 = vector.load %arg6[%c0_50, %c0_51] : memref<2x16xf32, #tpu.memory_space<vmem>>, vector<2x16xf32>
    %106 = arith.mulf %96, %105 : vector<2x16xf32>
    %107 = arith.mulf %90, %98 : vector<2x16xf32>
    %108 = arith.addf %106, %107 : vector<2x16xf32>
    %109 = math.tanh %108 : vector<2x16xf32>
    %110 = arith.mulf %104, %109 : vector<2x16xf32>
    %c0_52 = arith.constant 0 : index
    %c0_53 = arith.constant 0 : index
    %111 = vector.load %arg6[%c0_52, %c0_53] : memref<2x16xf32, #tpu.memory_space<vmem>>, vector<2x16xf32>
    tpu.vector_store %arg6[%c0_52, %c0_53], %108 {strides = array<i32>} : memref<2x16xf32, #tpu.memory_space<vmem>>, vector<2x16xf32>,
    %c0_54 = arith.constant 0 : index
    %c0_55 = arith.constant 0 : index
    %112 = vector.load %arg5[%c0_54, %c0_55] : memref<2x16xf32, #tpu.memory_space<vmem>>, vector<2x16xf32>
    tpu.vector_store %arg5[%c0_54, %c0_55], %110 {strides = array<i32>} : memref<2x16xf32, #tpu.memory_space<vmem>>, vector<2x16xf32>,
    %c0_56 = arith.constant 0 : index
    %c2_57 = arith.constant 2 : index
    %c0_58 = arith.constant 0 : index
    %c0_59 = arith.constant 0 : index
    %113 = vector.load %arg4[%c0_56, %c2_57, %c0_58, %c0_59] : memref<1x8x2x16xf32, #tpu.memory_space<vmem>>, vector<1x1x2x16xf32>
    %114 = vector.shape_cast %113 : vector<1x1x2x16xf32> to vector<2x16xf32>
    %115 = vector.shape_cast %110 : vector<2x16xf32> to vector<1x1x2x16xf32>
    tpu.vector_store %arg4[%c0_56, %c2_57, %c0_58, %c0_59], %115 {strides = array<i32>} : memref<1x8x2x16xf32, #tpu.memory_space<vmem>>, vector<1x1x2x16xf32>,
    %c0_60 = arith.constant 0 : index
    %c3 = arith.constant 3 : index
    %c0_61 = arith.constant 0 : index
    %c0_62 = arith.constant 0 : index
    %116 = vector.load %arg2[%c0_60, %c3, %c0_61, %c0_62] : memref<1x8x2x64xf32, #tpu.memory_space<vmem>>, vector<1x1x2x64xf32>
    %117 = vector.shape_cast %116 : vector<1x1x2x64xf32> to vector<2x64xf32>
    %c0_63 = arith.constant 0 : index
    %c0_64 = arith.constant 0 : index
    %118 = vector.load %arg5[%c0_63, %c0_64] : memref<2x16xf32, #tpu.memory_space<vmem>>, vector<2x16xf32>
    %119 = arith.truncf %118 : vector<2x16xf32> to vector<2x16xbf16>
    %cst_65 = arith.constant dense<0.000000e+00> : vector<2x64xf32>
    %120 = tpu.matmul %119, %4, %cst_65 {dimension_numbers = #tpu.dot_dimension_numbers<[1], [0], [0], [1], [0, 0, 1, 1], [], []>} : vector<2x16xbf16>, vector<16x64xbf16>, vector<2x64xf32> -> vector<2x64xf32>
    %121 = arith.addf %117, %120 : vector<2x64xf32>
    %122 = vector.extract_strided_slice %121 {offsets = [0, 0], sizes = [2, 16], strides = [1, 1]} : vector<2x64xf32> to vector<2x16xf32>
    %123 = arith.negf %122 : vector<2x16xf32>
    %124 = math.exp %123 : vector<2x16xf32>
    %cst_66 = arith.constant 1.000000e+00 : f32
    %125 = vector.broadcast %cst_66 : f32 to vector<2x16xf32>
    %126 = arith.addf %125, %124 : vector<2x16xf32>
    %127 = arith.divf %125, %126 : vector<2x16xf32>
    %128 = vector.extract_strided_slice %121 {offsets = [0, 16], sizes = [2, 16], strides = [1, 1]} : vector<2x64xf32> to vector<2x16xf32>
    %129 = arith.negf %128 : vector<2x16xf32>
    %130 = math.exp %129 : vector<2x16xf32>
    %cst_67 = arith.constant 1.000000e+00 : f32
    %131 = vector.broadcast %cst_67 : f32 to vector<2x16xf32>
    %132 = arith.addf %131, %130 : vector<2x16xf32>
    %133 = arith.divf %131, %132 : vector<2x16xf32>
    %134 = vector.extract_strided_slice %121 {offsets = [0, 32], sizes = [2, 16], strides = [1, 1]} : vector<2x64xf32> to vector<2x16xf32>
    %135 = math.tanh %134 : vector<2x16xf32>
    %136 = vector.extract_strided_slice %121 {offsets = [0, 48], sizes = [2, 16], strides = [1, 1]} : vector<2x64xf32> to vector<2x16xf32>
    %137 = arith.negf %136 : vector<2x16xf32>
    %138 = math.exp %137 : vector<2x16xf32>
    %cst_68 = arith.constant 1.000000e+00 : f32
    %139 = vector.broadcast %cst_68 : f32 to vector<2x16xf32>
    %140 = arith.addf %139, %138 : vector<2x16xf32>
    %141 = arith.divf %139, %140 : vector<2x16xf32>
    %c0_69 = arith.constant 0 : index
    %c0_70 = arith.constant 0 : index
    %142 = vector.load %arg6[%c0_69, %c0_70] : memref<2x16xf32, #tpu.memory_space<vmem>>, vector<2x16xf32>
    %143 = arith.mulf %133, %142 : vector<2x16xf32>
    %144 = arith.mulf %127, %135 : vector<2x16xf32>
    %145 = arith.addf %143, %144 : vector<2x16xf32>
    %146 = math.tanh %145 : vector<2x16xf32>
    %147 = arith.mulf %141, %146 : vector<2x16xf32>
    %c0_71 = arith.constant 0 : index
    %c0_72 = arith.constant 0 : index
    %148 = vector.load %arg6[%c0_71, %c0_72] : memref<2x16xf32, #tpu.memory_space<vmem>>, vector<2x16xf32>
    tpu.vector_store %arg6[%c0_71, %c0_72], %145 {strides = array<i32>} : memref<2x16xf32, #tpu.memory_space<vmem>>, vector<2x16xf32>,
    %c0_73 = arith.constant 0 : index
    %c0_74 = arith.constant 0 : index
    %149 = vector.load %arg5[%c0_73, %c0_74] : memref<2x16xf32, #tpu.memory_space<vmem>>, vector<2x16xf32>
    tpu.vector_store %arg5[%c0_73, %c0_74], %147 {strides = array<i32>} : memref<2x16xf32, #tpu.memory_space<vmem>>, vector<2x16xf32>,
    %c0_75 = arith.constant 0 : index
    %c3_76 = arith.constant 3 : index
    %c0_77 = arith.constant 0 : index
    %c0_78 = arith.constant 0 : index
    %150 = vector.load %arg4[%c0_75, %c3_76, %c0_77, %c0_78] : memref<1x8x2x16xf32, #tpu.memory_space<vmem>>, vector<1x1x2x16xf32>
    %151 = vector.shape_cast %150 : vector<1x1x2x16xf32> to vector<2x16xf32>
    %152 = vector.shape_cast %147 : vector<2x16xf32> to vector<1x1x2x16xf32>
    tpu.vector_store %arg4[%c0_75, %c3_76, %c0_77, %c0_78], %152 {strides = array<i32>} : memref<1x8x2x16xf32, #tpu.memory_space<vmem>>, vector<1x1x2x16xf32>,
    %c0_79 = arith.constant 0 : index
    %c4 = arith.constant 4 : index
    %c0_80 = arith.constant 0 : index
    %c0_81 = arith.constant 0 : index
    %153 = vector.load %arg2[%c0_79, %c4, %c0_80, %c0_81] : memref<1x8x2x64xf32, #tpu.memory_space<vmem>>, vector<1x1x2x64xf32>
    %154 = vector.shape_cast %153 : vector<1x1x2x64xf32> to vector<2x64xf32>
    %c0_82 = arith.constant 0 : index
    %c0_83 = arith.constant 0 : index
    %155 = vector.load %arg5[%c0_82, %c0_83] : memref<2x16xf32, #tpu.memory_space<vmem>>, vector<2x16xf32>
    %156 = arith.truncf %155 : vector<2x16xf32> to vector<2x16xbf16>
    %cst_84 = arith.constant dense<0.000000e+00> : vector<2x64xf32>
    %157 = tpu.matmul %156, %4, %cst_84 {dimension_numbers = #tpu.dot_dimension_numbers<[1], [0], [0], [1], [0, 0, 1, 1], [], []>} : vector<2x16xbf16>, vector<16x64xbf16>, vector<2x64xf32> -> vector<2x64xf32>
    %158 = arith.addf %154, %157 : vector<2x64xf32>
    %159 = vector.extract_strided_slice %158 {offsets = [0, 0], sizes = [2, 16], strides = [1, 1]} : vector<2x64xf32> to vector<2x16xf32>
    %160 = arith.negf %159 : vector<2x16xf32>
    %161 = math.exp %160 : vector<2x16xf32>
    %cst_85 = arith.constant 1.000000e+00 : f32
    %162 = vector.broadcast %cst_85 : f32 to vector<2x16xf32>
    %163 = arith.addf %162, %161 : vector<2x16xf32>
    %164 = arith.divf %162, %163 : vector<2x16xf32>
    %165 = vector.extract_strided_slice %158 {offsets = [0, 16], sizes = [2, 16], strides = [1, 1]} : vector<2x64xf32> to vector<2x16xf32>
    %166 = arith.negf %165 : vector<2x16xf32>
    %167 = math.exp %166 : vector<2x16xf32>
    %cst_86 = arith.constant 1.000000e+00 : f32
    %168 = vector.broadcast %cst_86 : f32 to vector<2x16xf32>
    %169 = arith.addf %168, %167 : vector<2x16xf32>
    %170 = arith.divf %168, %169 : vector<2x16xf32>
    %171 = vector.extract_strided_slice %158 {offsets = [0, 32], sizes = [2, 16], strides = [1, 1]} : vector<2x64xf32> to vector<2x16xf32>
    %172 = math.tanh %171 : vector<2x16xf32>
    %173 = vector.extract_strided_slice %158 {offsets = [0, 48], sizes = [2, 16], strides = [1, 1]} : vector<2x64xf32> to vector<2x16xf32>
    %174 = arith.negf %173 : vector<2x16xf32>
    %175 = math.exp %174 : vector<2x16xf32>
    %cst_87 = arith.constant 1.000000e+00 : f32
    %176 = vector.broadcast %cst_87 : f32 to vector<2x16xf32>
    %177 = arith.addf %176, %175 : vector<2x16xf32>
    %178 = arith.divf %176, %177 : vector<2x16xf32>
    %c0_88 = arith.constant 0 : index
    %c0_89 = arith.constant 0 : index
    %179 = vector.load %arg6[%c0_88, %c0_89] : memref<2x16xf32, #tpu.memory_space<vmem>>, vector<2x16xf32>
    %180 = arith.mulf %170, %179 : vector<2x16xf32>
    %181 = arith.mulf %164, %172 : vector<2x16xf32>
    %182 = arith.addf %180, %181 : vector<2x16xf32>
    %183 = math.tanh %182 : vector<2x16xf32>
    %184 = arith.mulf %178, %183 : vector<2x16xf32>
    %c0_90 = arith.constant 0 : index
    %c0_91 = arith.constant 0 : index
    %185 = vector.load %arg6[%c0_90, %c0_91] : memref<2x16xf32, #tpu.memory_space<vmem>>, vector<2x16xf32>
    tpu.vector_store %arg6[%c0_90, %c0_91], %182 {strides = array<i32>} : memref<2x16xf32, #tpu.memory_space<vmem>>, vector<2x16xf32>,
    %c0_92 = arith.constant 0 : index
    %c0_93 = arith.constant 0 : index
    %186 = vector.load %arg5[%c0_92, %c0_93] : memref<2x16xf32, #tpu.memory_space<vmem>>, vector<2x16xf32>
    tpu.vector_store %arg5[%c0_92, %c0_93], %184 {strides = array<i32>} : memref<2x16xf32, #tpu.memory_space<vmem>>, vector<2x16xf32>,
    %c0_94 = arith.constant 0 : index
    %c4_95 = arith.constant 4 : index
    %c0_96 = arith.constant 0 : index
    %c0_97 = arith.constant 0 : index
    %187 = vector.load %arg4[%c0_94, %c4_95, %c0_96, %c0_97] : memref<1x8x2x16xf32, #tpu.memory_space<vmem>>, vector<1x1x2x16xf32>
    %188 = vector.shape_cast %187 : vector<1x1x2x16xf32> to vector<2x16xf32>
    %189 = vector.shape_cast %184 : vector<2x16xf32> to vector<1x1x2x16xf32>
    tpu.vector_store %arg4[%c0_94, %c4_95, %c0_96, %c0_97], %189 {strides = array<i32>} : memref<1x8x2x16xf32, #tpu.memory_space<vmem>>, vector<1x1x2x16xf32>,
    %c0_98 = arith.constant 0 : index
    %c5 = arith.constant 5 : index
    %c0_99 = arith.constant 0 : index
    %c0_100 = arith.constant 0 : index
    %190 = vector.load %arg2[%c0_98, %c5, %c0_99, %c0_100] : memref<1x8x2x64xf32, #tpu.memory_space<vmem>>, vector<1x1x2x64xf32>
    %191 = vector.shape_cast %190 : vector<1x1x2x64xf32> to vector<2x64xf32>
    %c0_101 = arith.constant 0 : index
    %c0_102 = arith.constant 0 : index
    %192 = vector.load %arg5[%c0_101, %c0_102] : memref<2x16xf32, #tpu.memory_space<vmem>>, vector<2x16xf32>
    %193 = arith.truncf %192 : vector<2x16xf32> to vector<2x16xbf16>
    %cst_103 = arith.constant dense<0.000000e+00> : vector<2x64xf32>
    %194 = tpu.matmul %193, %4, %cst_103 {dimension_numbers = #tpu.dot_dimension_numbers<[1], [0], [0], [1], [0, 0, 1, 1], [], []>} : vector<2x16xbf16>, vector<16x64xbf16>, vector<2x64xf32> -> vector<2x64xf32>
    %195 = arith.addf %191, %194 : vector<2x64xf32>
    %196 = vector.extract_strided_slice %195 {offsets = [0, 0], sizes = [2, 16], strides = [1, 1]} : vector<2x64xf32> to vector<2x16xf32>
    %197 = arith.negf %196 : vector<2x16xf32>
    %198 = math.exp %197 : vector<2x16xf32>
    %cst_104 = arith.constant 1.000000e+00 : f32
    %199 = vector.broadcast %cst_104 : f32 to vector<2x16xf32>
    %200 = arith.addf %199, %198 : vector<2x16xf32>
    %201 = arith.divf %199, %200 : vector<2x16xf32>
    %202 = vector.extract_strided_slice %195 {offsets = [0, 16], sizes = [2, 16], strides = [1, 1]} : vector<2x64xf32> to vector<2x16xf32>
    %203 = arith.negf %202 : vector<2x16xf32>
    %204 = math.exp %203 : vector<2x16xf32>
    %cst_105 = arith.constant 1.000000e+00 : f32
    %205 = vector.broadcast %cst_105 : f32 to vector<2x16xf32>
    %206 = arith.addf %205, %204 : vector<2x16xf32>
    %207 = arith.divf %205, %206 : vector<2x16xf32>
    %208 = vector.extract_strided_slice %195 {offsets = [0, 32], sizes = [2, 16], strides = [1, 1]} : vector<2x64xf32> to vector<2x16xf32>
    %209 = math.tanh %208 : vector<2x16xf32>
    %210 = vector.extract_strided_slice %195 {offsets = [0, 48], sizes = [2, 16], strides = [1, 1]} : vector<2x64xf32> to vector<2x16xf32>
    %211 = arith.negf %210 : vector<2x16xf32>
    %212 = math.exp %211 : vector<2x16xf32>
    %cst_106 = arith.constant 1.000000e+00 : f32
    %213 = vector.broadcast %cst_106 : f32 to vector<2x16xf32>
    %214 = arith.addf %213, %212 : vector<2x16xf32>
    %215 = arith.divf %213, %214 : vector<2x16xf32>
    %c0_107 = arith.constant 0 : index
    %c0_108 = arith.constant 0 : index
    %216 = vector.load %arg6[%c0_107, %c0_108] : memref<2x16xf32, #tpu.memory_space<vmem>>, vector<2x16xf32>
    %217 = arith.mulf %207, %216 : vector<2x16xf32>
    %218 = arith.mulf %201, %209 : vector<2x16xf32>
    %219 = arith.addf %217, %218 : vector<2x16xf32>
    %220 = math.tanh %219 : vector<2x16xf32>
    %221 = arith.mulf %215, %220 : vector<2x16xf32>
    %c0_109 = arith.constant 0 : index
    %c0_110 = arith.constant 0 : index
    %222 = vector.load %arg6[%c0_109, %c0_110] : memref<2x16xf32, #tpu.memory_space<vmem>>, vector<2x16xf32>
    tpu.vector_store %arg6[%c0_109, %c0_110], %219 {strides = array<i32>} : memref<2x16xf32, #tpu.memory_space<vmem>>, vector<2x16xf32>,
    %c0_111 = arith.constant 0 : index
    %c0_112 = arith.constant 0 : index
    %223 = vector.load %arg5[%c0_111, %c0_112] : memref<2x16xf32, #tpu.memory_space<vmem>>, vector<2x16xf32>
    tpu.vector_store %arg5[%c0_111, %c0_112], %221 {strides = array<i32>} : memref<2x16xf32, #tpu.memory_space<vmem>>, vector<2x16xf32>,
    %c0_113 = arith.constant 0 : index
    %c5_114 = arith.constant 5 : index
    %c0_115 = arith.constant 0 : index
    %c0_116 = arith.constant 0 : index
    %224 = vector.load %arg4[%c0_113, %c5_114, %c0_115, %c0_116] : memref<1x8x2x16xf32, #tpu.memory_space<vmem>>, vector<1x1x2x16xf32>
    %225 = vector.shape_cast %224 : vector<1x1x2x16xf32> to vector<2x16xf32>
    %226 = vector.shape_cast %221 : vector<2x16xf32> to vector<1x1x2x16xf32>
    tpu.vector_store %arg4[%c0_113, %c5_114, %c0_115, %c0_116], %226 {strides = array<i32>} : memref<1x8x2x16xf32, #tpu.memory_space<vmem>>, vector<1x1x2x16xf32>,
    %c0_117 = arith.constant 0 : index
    %c6 = arith.constant 6 : index
    %c0_118 = arith.constant 0 : index
    %c0_119 = arith.constant 0 : index
    %227 = vector.load %arg2[%c0_117, %c6, %c0_118, %c0_119] : memref<1x8x2x64xf32, #tpu.memory_space<vmem>>, vector<1x1x2x64xf32>
    %228 = vector.shape_cast %227 : vector<1x1x2x64xf32> to vector<2x64xf32>
    %c0_120 = arith.constant 0 : index
    %c0_121 = arith.constant 0 : index
    %229 = vector.load %arg5[%c0_120, %c0_121] : memref<2x16xf32, #tpu.memory_space<vmem>>, vector<2x16xf32>
    %230 = arith.truncf %229 : vector<2x16xf32> to vector<2x16xbf16>
    %cst_122 = arith.constant dense<0.000000e+00> : vector<2x64xf32>
    %231 = tpu.matmul %230, %4, %cst_122 {dimension_numbers = #tpu.dot_dimension_numbers<[1], [0], [0], [1], [0, 0, 1, 1], [], []>} : vector<2x16xbf16>, vector<16x64xbf16>, vector<2x64xf32> -> vector<2x64xf32>
    %232 = arith.addf %228, %231 : vector<2x64xf32>
    %233 = vector.extract_strided_slice %232 {offsets = [0, 0], sizes = [2, 16], strides = [1, 1]} : vector<2x64xf32> to vector<2x16xf32>
    %234 = arith.negf %233 : vector<2x16xf32>
    %235 = math.exp %234 : vector<2x16xf32>
    %cst_123 = arith.constant 1.000000e+00 : f32
    %236 = vector.broadcast %cst_123 : f32 to vector<2x16xf32>
    %237 = arith.addf %236, %235 : vector<2x16xf32>
    %238 = arith.divf %236, %237 : vector<2x16xf32>
    %239 = vector.extract_strided_slice %232 {offsets = [0, 16], sizes = [2, 16], strides = [1, 1]} : vector<2x64xf32> to vector<2x16xf32>
    %240 = arith.negf %239 : vector<2x16xf32>
    %241 = math.exp %240 : vector<2x16xf32>
    %cst_124 = arith.constant 1.000000e+00 : f32
    %242 = vector.broadcast %cst_124 : f32 to vector<2x16xf32>
    %243 = arith.addf %242, %241 : vector<2x16xf32>
    %244 = arith.divf %242, %243 : vector<2x16xf32>
    %245 = vector.extract_strided_slice %232 {offsets = [0, 32], sizes = [2, 16], strides = [1, 1]} : vector<2x64xf32> to vector<2x16xf32>
    %246 = math.tanh %245 : vector<2x16xf32>
    %247 = vector.extract_strided_slice %232 {offsets = [0, 48], sizes = [2, 16], strides = [1, 1]} : vector<2x64xf32> to vector<2x16xf32>
    %248 = arith.negf %247 : vector<2x16xf32>
    %249 = math.exp %248 : vector<2x16xf32>
    %cst_125 = arith.constant 1.000000e+00 : f32
    %250 = vector.broadcast %cst_125 : f32 to vector<2x16xf32>
    %251 = arith.addf %250, %249 : vector<2x16xf32>
    %252 = arith.divf %250, %251 : vector<2x16xf32>
    %c0_126 = arith.constant 0 : index
    %c0_127 = arith.constant 0 : index
    %253 = vector.load %arg6[%c0_126, %c0_127] : memref<2x16xf32, #tpu.memory_space<vmem>>, vector<2x16xf32>
    %254 = arith.mulf %244, %253 : vector<2x16xf32>
    %255 = arith.mulf %238, %246 : vector<2x16xf32>
    %256 = arith.addf %254, %255 : vector<2x16xf32>
    %257 = math.tanh %256 : vector<2x16xf32>
    %258 = arith.mulf %252, %257 : vector<2x16xf32>
    %c0_128 = arith.constant 0 : index
    %c0_129 = arith.constant 0 : index
    %259 = vector.load %arg6[%c0_128, %c0_129] : memref<2x16xf32, #tpu.memory_space<vmem>>, vector<2x16xf32>
    tpu.vector_store %arg6[%c0_128, %c0_129], %256 {strides = array<i32>} : memref<2x16xf32, #tpu.memory_space<vmem>>, vector<2x16xf32>,
    %c0_130 = arith.constant 0 : index
    %c0_131 = arith.constant 0 : index
    %260 = vector.load %arg5[%c0_130, %c0_131] : memref<2x16xf32, #tpu.memory_space<vmem>>, vector<2x16xf32>
    tpu.vector_store %arg5[%c0_130, %c0_131], %258 {strides = array<i32>} : memref<2x16xf32, #tpu.memory_space<vmem>>, vector<2x16xf32>,
    %c0_132 = arith.constant 0 : index
    %c6_133 = arith.constant 6 : index
    %c0_134 = arith.constant 0 : index
    %c0_135 = arith.constant 0 : index
    %261 = vector.load %arg4[%c0_132, %c6_133, %c0_134, %c0_135] : memref<1x8x2x16xf32, #tpu.memory_space<vmem>>, vector<1x1x2x16xf32>
    %262 = vector.shape_cast %261 : vector<1x1x2x16xf32> to vector<2x16xf32>
    %263 = vector.shape_cast %258 : vector<2x16xf32> to vector<1x1x2x16xf32>
    tpu.vector_store %arg4[%c0_132, %c6_133, %c0_134, %c0_135], %263 {strides = array<i32>} : memref<1x8x2x16xf32, #tpu.memory_space<vmem>>, vector<1x1x2x16xf32>,
    %c0_136 = arith.constant 0 : index
    %c7 = arith.constant 7 : index
    %c0_137 = arith.constant 0 : index
    %c0_138 = arith.constant 0 : index
    %264 = vector.load %arg2[%c0_136, %c7, %c0_137, %c0_138] : memref<1x8x2x64xf32, #tpu.memory_space<vmem>>, vector<1x1x2x64xf32>
    %265 = vector.shape_cast %264 : vector<1x1x2x64xf32> to vector<2x64xf32>
    %c0_139 = arith.constant 0 : index
    %c0_140 = arith.constant 0 : index
    %266 = vector.load %arg5[%c0_139, %c0_140] : memref<2x16xf32, #tpu.memory_space<vmem>>, vector<2x16xf32>
    %267 = arith.truncf %266 : vector<2x16xf32> to vector<2x16xbf16>
    %cst_141 = arith.constant dense<0.000000e+00> : vector<2x64xf32>
    %268 = tpu.matmul %267, %4, %cst_141 {dimension_numbers = #tpu.dot_dimension_numbers<[1], [0], [0], [1], [0, 0, 1, 1], [], []>} : vector<2x16xbf16>, vector<16x64xbf16>, vector<2x64xf32> -> vector<2x64xf32>
    %269 = arith.addf %265, %268 : vector<2x64xf32>
    %270 = vector.extract_strided_slice %269 {offsets = [0, 0], sizes = [2, 16], strides = [1, 1]} : vector<2x64xf32> to vector<2x16xf32>
    %271 = arith.negf %270 : vector<2x16xf32>
    %272 = math.exp %271 : vector<2x16xf32>
    %cst_142 = arith.constant 1.000000e+00 : f32
    %273 = vector.broadcast %cst_142 : f32 to vector<2x16xf32>
    %274 = arith.addf %273, %272 : vector<2x16xf32>
    %275 = arith.divf %273, %274 : vector<2x16xf32>
    %276 = vector.extract_strided_slice %269 {offsets = [0, 16], sizes = [2, 16], strides = [1, 1]} : vector<2x64xf32> to vector<2x16xf32>
    %277 = arith.negf %276 : vector<2x16xf32>
    %278 = math.exp %277 : vector<2x16xf32>
    %cst_143 = arith.constant 1.000000e+00 : f32
    %279 = vector.broadcast %cst_143 : f32 to vector<2x16xf32>
    %280 = arith.addf %279, %278 : vector<2x16xf32>
    %281 = arith.divf %279, %280 : vector<2x16xf32>
    %282 = vector.extract_strided_slice %269 {offsets = [0, 32], sizes = [2, 16], strides = [1, 1]} : vector<2x64xf32> to vector<2x16xf32>
    %283 = math.tanh %282 : vector<2x16xf32>
    %284 = vector.extract_strided_slice %269 {offsets = [0, 48], sizes = [2, 16], strides = [1, 1]} : vector<2x64xf32> to vector<2x16xf32>
    %285 = arith.negf %284 : vector<2x16xf32>
    %286 = math.exp %285 : vector<2x16xf32>
    %cst_144 = arith.constant 1.000000e+00 : f32
    %287 = vector.broadcast %cst_144 : f32 to vector<2x16xf32>
    %288 = arith.addf %287, %286 : vector<2x16xf32>
    %289 = arith.divf %287, %288 : vector<2x16xf32>
    %c0_145 = arith.constant 0 : index
    %c0_146 = arith.constant 0 : index
    %290 = vector.load %arg6[%c0_145, %c0_146] : memref<2x16xf32, #tpu.memory_space<vmem>>, vector<2x16xf32>
    %291 = arith.mulf %281, %290 : vector<2x16xf32>
    %292 = arith.mulf %275, %283 : vector<2x16xf32>
    %293 = arith.addf %291, %292 : vector<2x16xf32>
    %294 = math.tanh %293 : vector<2x16xf32>
    %295 = arith.mulf %289, %294 : vector<2x16xf32>
    %c0_147 = arith.constant 0 : index
    %c0_148 = arith.constant 0 : index
    %296 = vector.load %arg6[%c0_147, %c0_148] : memref<2x16xf32, #tpu.memory_space<vmem>>, vector<2x16xf32>
    tpu.vector_store %arg6[%c0_147, %c0_148], %293 {strides = array<i32>} : memref<2x16xf32, #tpu.memory_space<vmem>>, vector<2x16xf32>,
    %c0_149 = arith.constant 0 : index
    %c0_150 = arith.constant 0 : index
    %297 = vector.load %arg5[%c0_149, %c0_150] : memref<2x16xf32, #tpu.memory_space<vmem>>, vector<2x16xf32>
    tpu.vector_store %arg5[%c0_149, %c0_150], %295 {strides = array<i32>} : memref<2x16xf32, #tpu.memory_space<vmem>>, vector<2x16xf32>,
    %c0_151 = arith.constant 0 : index
    %c7_152 = arith.constant 7 : index
    %c0_153 = arith.constant 0 : index
    %c0_154 = arith.constant 0 : index
    %298 = vector.load %arg4[%c0_151, %c7_152, %c0_153, %c0_154] : memref<1x8x2x16xf32, #tpu.memory_space<vmem>>, vector<1x1x2x16xf32>
    %299 = vector.shape_cast %298 : vector<1x1x2x16xf32> to vector<2x16xf32>
    %300 = vector.shape_cast %295 : vector<2x16xf32> to vector<1x1x2x16xf32>
    tpu.vector_store %arg4[%c0_151, %c7_152, %c0_153, %c0_154], %300 {strides = array<i32>} : memref<1x8x2x16xf32, #tpu.memory_space<vmem>>, vector<1x1x2x16xf32>,
    return
  }
  func.func @transform_0(%arg0: i32, %arg1: i32) -> (i32, i32, i32, i32) {
    %c0_i32 = arith.constant 0 : i32
    %c0_i32_0 = arith.constant 0 : i32
    %c0_i32_1 = arith.constant 0 : i32
    return %arg0, %arg1, %c0_i32, %c0_i32_0 : i32, i32, i32, i32
  }
  func.func @transform_1(%arg0: i32, %arg1: i32) -> (i32, i32, i32) {
    %c0_i32 = arith.constant 0 : i32
    %c0_i32_0 = arith.constant 0 : i32
    %c0_i32_1 = arith.constant 0 : i32
    return %arg0, %c0_i32, %c0_i32_0 : i32, i32, i32
  }
  func.func @transform_2(%arg0: i32, %arg1: i32) -> (i32, i32, i32, i32) {
    %c0_i32 = arith.constant 0 : i32
    %c0_i32_0 = arith.constant 0 : i32
    %c0_i32_1 = arith.constant 0 : i32
    return %arg0, %arg1, %c0_i32, %c0_i32_0 : i32, i32, i32, i32
  }
}

module attributes {stable_mosaic.version = 11 : i64} {
  func.func @_linear_kernel(%arg0: i32, %arg1: memref<16x32xbf16, #tpu.memory_space<vmem>>, %arg2: memref<32x128xbf16, #tpu.memory_space<vmem>>, %arg3: memref<1x128xf32, #tpu.memory_space<vmem>>, %arg4: memref<16x128xf32, #tpu.memory_space<vmem>>) attributes {dimension_semantics = [#tpu.dimension_semantics<parallel>], iteration_bounds = array<i64: 1>, scalar_prefetch = 0 : i64, scratch_operands = 0 : i64, tpu.core_type = #tpu.core_type<tc>, window_params = [{transform_indices = @transform_0, window_bounds = array<i64: 16, 32>}, {pipeline_mode = #tpu.pipeline_mode<synchronous>, transform_indices = @transform_1, window_bounds = array<i64: 32, 128>}, {pipeline_mode = #tpu.pipeline_mode<synchronous>, transform_indices = @transform_2, window_bounds = array<i64: 1, 128>}, {transform_indices = @transform_3, window_bounds = array<i64: 16, 128>}]} {
    %c0 = arith.constant 0 : index
    %c0_0 = arith.constant 0 : index
    %0 = vector.load %arg1[%c0, %c0_0] : memref<16x32xbf16, #tpu.memory_space<vmem>>, vector<16x32xbf16>
    %c0_1 = arith.constant 0 : index
    %c0_2 = arith.constant 0 : index
    %1 = vector.load %arg2[%c0_1, %c0_2] : memref<32x128xbf16, #tpu.memory_space<vmem>>, vector<32x128xbf16>
    %cst = arith.constant dense<0.000000e+00> : vector<16x128xf32>
    %2 = tpu.matmul %0, %1, %cst {dimension_numbers = #tpu.dot_dimension_numbers<[1], [0], [0], [1], [0, 0, 1, 1], [], []>} : vector<16x32xbf16>, vector<32x128xbf16>, vector<16x128xf32> -> vector<16x128xf32>
    %c0_3 = arith.constant 0 : index
    %c0_4 = arith.constant 0 : index
    %3 = vector.load %arg3[%c0_3, %c0_4] : memref<1x128xf32, #tpu.memory_space<vmem>>, vector<1x128xf32>
    %4 = vector.broadcast %3 : vector<1x128xf32> to vector<16x128xf32>
    %5 = arith.addf %2, %4 : vector<16x128xf32>
    %c0_5 = arith.constant 0 : index
    %c0_6 = arith.constant 0 : index
    %6 = vector.load %arg4[%c0_5, %c0_6] : memref<16x128xf32, #tpu.memory_space<vmem>>, vector<16x128xf32>
    tpu.vector_store %arg4[%c0_5, %c0_6], %5 {strides = array<i32>} : memref<16x128xf32, #tpu.memory_space<vmem>>, vector<16x128xf32>,
    return
  }
  func.func @transform_0(%arg0: i32) -> (i32, i32) {
    %c0_i32 = arith.constant 0 : i32
    %c0_i32_0 = arith.constant 0 : i32
    return %arg0, %c0_i32 : i32, i32
  }
  func.func @transform_1(%arg0: i32) -> (i32, i32) {
    %c0_i32 = arith.constant 0 : i32
    %c0_i32_0 = arith.constant 0 : i32
    %c0_i32_1 = arith.constant 0 : i32
    return %c0_i32, %c0_i32_0 : i32, i32
  }
  func.func @transform_2(%arg0: i32) -> (i32, i32) {
    %c0_i32 = arith.constant 0 : i32
    %c0_i32_0 = arith.constant 0 : i32
    %c0_i32_1 = arith.constant 0 : i32
    return %c0_i32, %c0_i32_0 : i32, i32
  }
  func.func @transform_3(%arg0: i32) -> (i32, i32) {
    %c0_i32 = arith.constant 0 : i32
    %c0_i32_0 = arith.constant 0 : i32
    return %arg0, %c0_i32 : i32, i32
  }
}

module attributes {stable_mosaic.version = 11 : i64} {
  func.func @_crf_norm_kernel(%arg0: i32, %arg1: memref<8x2x128xf32, #tpu.memory_space<vmem>>, %arg2: memref<128x128xf32, #tpu.memory_space<vmem>>, %arg3: memref<1x128xf32, #tpu.memory_space<vmem>>, %arg4: memref<1x128xf32, #tpu.memory_space<vmem>>, %arg5: memref<2x1xf32, #tpu.memory_space<vmem>>, %arg6: memref<2x128xf32, #tpu.memory_space<vmem>>) attributes {dimension_semantics = [#tpu.dimension_semantics<arbitrary>], iteration_bounds = array<i64: 1>, scalar_prefetch = 0 : i64, scratch_operands = 1 : i64, tpu.core_type = #tpu.core_type<tc>, window_params = [{transform_indices = @transform_0, window_bounds = array<i64: 8, 2, 128>}, {pipeline_mode = #tpu.pipeline_mode<synchronous>, transform_indices = @transform_1, window_bounds = array<i64: 128, 128>}, {pipeline_mode = #tpu.pipeline_mode<synchronous>, transform_indices = @transform_2, window_bounds = array<i64: 1, 128>}, {pipeline_mode = #tpu.pipeline_mode<synchronous>, transform_indices = @transform_3, window_bounds = array<i64: 1, 128>}, {pipeline_mode = #tpu.pipeline_mode<synchronous>, transform_indices = @transform_4, window_bounds = array<i64: 2, 1>}]} {
    %c0 = arith.constant 0 : index
    %c0_0 = arith.constant 0 : index
    %c0_1 = arith.constant 0 : index
    %0 = vector.load %arg1[%c0, %c0_0, %c0_1] : memref<8x2x128xf32, #tpu.memory_space<vmem>>, vector<1x2x128xf32>
    %1 = vector.shape_cast %0 : vector<1x2x128xf32> to vector<2x128xf32>
    %c0_i32 = arith.constant 0 : i32
    %2 = arith.cmpi eq, %arg0, %c0_i32 : i32
    %3 = arith.extui %2 : i1 to i32
    %c0_i32_2 = arith.constant 0 : i32
    %4 = arith.cmpi ne, %3, %c0_i32_2 : i32
    scf.if %4 {
      %c0_83 = arith.constant 0 : index
      %c0_84 = arith.constant 0 : index
      %130 = vector.load %arg3[%c0_83, %c0_84] : memref<1x128xf32, #tpu.memory_space<vmem>>, vector<1x128xf32>
      %131 = vector.broadcast %130 : vector<1x128xf32> to vector<2x128xf32>
      %132 = arith.addf %131, %1 : vector<2x128xf32>
      %c0_85 = arith.constant 0 : index
      %c0_86 = arith.constant 0 : index
      %133 = vector.load %arg6[%c0_85, %c0_86] : memref<2x128xf32, #tpu.memory_space<vmem>>, vector<2x128xf32>
      tpu.vector_store %arg6[%c0_85, %c0_86], %132 {strides = array<i32>} : memref<2x128xf32, #tpu.memory_space<vmem>>, vector<2x128xf32>,
    } else {
    }
    %c0_i32_3 = arith.constant 0 : i32
    %5 = arith.cmpi sgt, %arg0, %c0_i32_3 : i32
    %6 = arith.extui %5 : i1 to i32
    %c0_i32_4 = arith.constant 0 : i32
    %7 = arith.cmpi ne, %6, %c0_i32_4 : i32
    scf.if %7 {
      %c0_83 = arith.constant 0 : index
      %c0_84 = arith.constant 0 : index
      %130 = vector.load %arg6[%c0_83, %c0_84] : memref<2x128xf32, #tpu.memory_space<vmem>>, vector<2x128xf32>
      %cst_85 = arith.constant dense<0xFF800000> : vector<2xf32>
      %131 = vector.multi_reduction <maximumf>, %130, %cst_85 [1] : vector<2x128xf32> to vector<2xf32>
      %132 = vector.shape_cast %131 : vector<2xf32> to vector<2x1xf32>
      %133 = vector.broadcast %132 : vector<2x1xf32> to vector<2x128xf32>
      %134 = arith.subf %130, %133 : vector<2x128xf32>
      %135 = math.exp %134 : vector<2x128xf32>
      %c0_86 = arith.constant 0 : index
      %c0_87 = arith.constant 0 : index
      %136 = vector.load %arg2[%c0_86, %c0_87] : memref<128x128xf32, #tpu.memory_space<vmem>>, vector<128x128xf32>
      %cst_88 = arith.constant dense<0.000000e+00> : vector<2x128xf32>
      %137 = tpu.matmul %135, %136, %cst_88 {dimension_numbers = #tpu.dot_dimension_numbers<[1], [0], [0], [1], [0, 0, 1, 1], [], []>} : vector<2x128xf32>, vector<128x128xf32>, vector<2x128xf32> -> vector<2x128xf32>
      %138 = math.log %137 : vector<2x128xf32>
      %139 = vector.broadcast %132 : vector<2x1xf32> to vector<2x128xf32>
      %140 = arith.addf %139, %138 : vector<2x128xf32>
      %cst_89 = arith.constant -1.000000e+30 : f32
      %141 = vector.broadcast %cst_89 : f32 to vector<2x128xf32>
      %142 = arith.maximumf %140, %141 : vector<2x128xf32>
      %143 = arith.addf %142, %1 : vector<2x128xf32>
      %c0_90 = arith.constant 0 : index
      %c0_91 = arith.constant 0 : index
      %144 = vector.load %arg6[%c0_90, %c0_91] : memref<2x128xf32, #tpu.memory_space<vmem>>, vector<2x128xf32>
      tpu.vector_store %arg6[%c0_90, %c0_91], %143 {strides = array<i32>} : memref<2x128xf32, #tpu.memory_space<vmem>>, vector<2x128xf32>,
    } else {
    }
    %c1 = arith.constant 1 : index
    %c0_5 = arith.constant 0 : index
    %c0_6 = arith.constant 0 : index
    %8 = vector.load %arg1[%c1, %c0_5, %c0_6] : memref<8x2x128xf32, #tpu.memory_space<vmem>>, vector<1x2x128xf32>
    %9 = vector.shape_cast %8 : vector<1x2x128xf32> to vector<2x128xf32>
    %c0_7 = arith.constant 0 : index
    %c0_8 = arith.constant 0 : index
    %10 = vector.load %arg6[%c0_7, %c0_8] : memref<2x128xf32, #tpu.memory_space<vmem>>, vector<2x128xf32>
    %cst = arith.constant dense<0xFF800000> : vector<2xf32>
    %11 = vector.multi_reduction <maximumf>, %10, %cst [1] : vector<2x128xf32> to vector<2xf32>
    %12 = vector.shape_cast %11 : vector<2xf32> to vector<2x1xf32>
    %13 = vector.broadcast %12 : vector<2x1xf32> to vector<2x128xf32>
    %14 = arith.subf %10, %13 : vector<2x128xf32>
    %15 = math.exp %14 : vector<2x128xf32>
    %c0_9 = arith.constant 0 : index
    %c0_10 = arith.constant 0 : index
    %16 = vector.load %arg2[%c0_9, %c0_10] : memref<128x128xf32, #tpu.memory_space<vmem>>, vector<128x128xf32>
    %cst_11 = arith.constant dense<0.000000e+00> : vector<2x128xf32>
    %17 = tpu.matmul %15, %16, %cst_11 {dimension_numbers = #tpu.dot_dimension_numbers<[1], [0], [0], [1], [0, 0, 1, 1], [], []>} : vector<2x128xf32>, vector<128x128xf32>, vector<2x128xf32> -> vector<2x128xf32>
    %18 = math.log %17 : vector<2x128xf32>
    %19 = vector.broadcast %12 : vector<2x1xf32> to vector<2x128xf32>
    %20 = arith.addf %19, %18 : vector<2x128xf32>
    %cst_12 = arith.constant -1.000000e+30 : f32
    %21 = vector.broadcast %cst_12 : f32 to vector<2x128xf32>
    %22 = arith.maximumf %20, %21 : vector<2x128xf32>
    %23 = arith.addf %22, %9 : vector<2x128xf32>
    %c0_13 = arith.constant 0 : index
    %c0_14 = arith.constant 0 : index
    %24 = vector.load %arg6[%c0_13, %c0_14] : memref<2x128xf32, #tpu.memory_space<vmem>>, vector<2x128xf32>
    tpu.vector_store %arg6[%c0_13, %c0_14], %23 {strides = array<i32>} : memref<2x128xf32, #tpu.memory_space<vmem>>, vector<2x128xf32>,
    %c2 = arith.constant 2 : index
    %c0_15 = arith.constant 0 : index
    %c0_16 = arith.constant 0 : index
    %25 = vector.load %arg1[%c2, %c0_15, %c0_16] : memref<8x2x128xf32, #tpu.memory_space<vmem>>, vector<1x2x128xf32>
    %26 = vector.shape_cast %25 : vector<1x2x128xf32> to vector<2x128xf32>
    %c0_17 = arith.constant 0 : index
    %c0_18 = arith.constant 0 : index
    %27 = vector.load %arg6[%c0_17, %c0_18] : memref<2x128xf32, #tpu.memory_space<vmem>>, vector<2x128xf32>
    %cst_19 = arith.constant dense<0xFF800000> : vector<2xf32>
    %28 = vector.multi_reduction <maximumf>, %27, %cst_19 [1] : vector<2x128xf32> to vector<2xf32>
    %29 = vector.shape_cast %28 : vector<2xf32> to vector<2x1xf32>
    %30 = vector.broadcast %29 : vector<2x1xf32> to vector<2x128xf32>
    %31 = arith.subf %27, %30 : vector<2x128xf32>
    %32 = math.exp %31 : vector<2x128xf32>
    %c0_20 = arith.constant 0 : index
    %c0_21 = arith.constant 0 : index
    %33 = vector.load %arg2[%c0_20, %c0_21] : memref<128x128xf32, #tpu.memory_space<vmem>>, vector<128x128xf32>
    %cst_22 = arith.constant dense<0.000000e+00> : vector<2x128xf32>
    %34 = tpu.matmul %32, %33, %cst_22 {dimension_numbers = #tpu.dot_dimension_numbers<[1], [0], [0], [1], [0, 0, 1, 1], [], []>} : vector<2x128xf32>, vector<128x128xf32>, vector<2x128xf32> -> vector<2x128xf32>
    %35 = math.log %34 : vector<2x128xf32>
    %36 = vector.broadcast %29 : vector<2x1xf32> to vector<2x128xf32>
    %37 = arith.addf %36, %35 : vector<2x128xf32>
    %cst_23 = arith.constant -1.000000e+30 : f32
    %38 = vector.broadcast %cst_23 : f32 to vector<2x128xf32>
    %39 = arith.maximumf %37, %38 : vector<2x128xf32>
    %40 = arith.addf %39, %26 : vector<2x128xf32>
    %c0_24 = arith.constant 0 : index
    %c0_25 = arith.constant 0 : index
    %41 = vector.load %arg6[%c0_24, %c0_25] : memref<2x128xf32, #tpu.memory_space<vmem>>, vector<2x128xf32>
    tpu.vector_store %arg6[%c0_24, %c0_25], %40 {strides = array<i32>} : memref<2x128xf32, #tpu.memory_space<vmem>>, vector<2x128xf32>,
    %c3 = arith.constant 3 : index
    %c0_26 = arith.constant 0 : index
    %c0_27 = arith.constant 0 : index
    %42 = vector.load %arg1[%c3, %c0_26, %c0_27] : memref<8x2x128xf32, #tpu.memory_space<vmem>>, vector<1x2x128xf32>
    %43 = vector.shape_cast %42 : vector<1x2x128xf32> to vector<2x128xf32>
    %c0_28 = arith.constant 0 : index
    %c0_29 = arith.constant 0 : index
    %44 = vector.load %arg6[%c0_28, %c0_29] : memref<2x128xf32, #tpu.memory_space<vmem>>, vector<2x128xf32>
    %cst_30 = arith.constant dense<0xFF800000> : vector<2xf32>
    %45 = vector.multi_reduction <maximumf>, %44, %cst_30 [1] : vector<2x128xf32> to vector<2xf32>
    %46 = vector.shape_cast %45 : vector<2xf32> to vector<2x1xf32>
    %47 = vector.broadcast %46 : vector<2x1xf32> to vector<2x128xf32>
    %48 = arith.subf %44, %47 : vector<2x128xf32>
    %49 = math.exp %48 : vector<2x128xf32>
    %c0_31 = arith.constant 0 : index
    %c0_32 = arith.constant 0 : index
    %50 = vector.load %arg2[%c0_31, %c0_32] : memref<128x128xf32, #tpu.memory_space<vmem>>, vector<128x128xf32>
    %cst_33 = arith.constant dense<0.000000e+00> : vector<2x128xf32>
    %51 = tpu.matmul %49, %50, %cst_33 {dimension_numbers = #tpu.dot_dimension_numbers<[1], [0], [0], [1], [0, 0, 1, 1], [], []>} : vector<2x128xf32>, vector<128x128xf32>, vector<2x128xf32> -> vector<2x128xf32>
    %52 = math.log %51 : vector<2x128xf32>
    %53 = vector.broadcast %46 : vector<2x1xf32> to vector<2x128xf32>
    %54 = arith.addf %53, %52 : vector<2x128xf32>
    %cst_34 = arith.constant -1.000000e+30 : f32
    %55 = vector.broadcast %cst_34 : f32 to vector<2x128xf32>
    %56 = arith.maximumf %54, %55 : vector<2x128xf32>
    %57 = arith.addf %56, %43 : vector<2x128xf32>
    %c0_35 = arith.constant 0 : index
    %c0_36 = arith.constant 0 : index
    %58 = vector.load %arg6[%c0_35, %c0_36] : memref<2x128xf32, #tpu.memory_space<vmem>>, vector<2x128xf32>
    tpu.vector_store %arg6[%c0_35, %c0_36], %57 {strides = array<i32>} : memref<2x128xf32, #tpu.memory_space<vmem>>, vector<2x128xf32>,
    %c4 = arith.constant 4 : index
    %c0_37 = arith.constant 0 : index
    %c0_38 = arith.constant 0 : index
    %59 = vector.load %arg1[%c4, %c0_37, %c0_38] : memref<8x2x128xf32, #tpu.memory_space<vmem>>, vector<1x2x128xf32>
    %60 = vector.shape_cast %59 : vector<1x2x128xf32> to vector<2x128xf32>
    %c0_39 = arith.constant 0 : index
    %c0_40 = arith.constant 0 : index
    %61 = vector.load %arg6[%c0_39, %c0_40] : memref<2x128xf32, #tpu.memory_space<vmem>>, vector<2x128xf32>
    %cst_41 = arith.constant dense<0xFF800000> : vector<2xf32>
    %62 = vector.multi_reduction <maximumf>, %61, %cst_41 [1] : vector<2x128xf32> to vector<2xf32>
    %63 = vector.shape_cast %62 : vector<2xf32> to vector<2x1xf32>
    %64 = vector.broadcast %63 : vector<2x1xf32> to vector<2x128xf32>
    %65 = arith.subf %61, %64 : vector<2x128xf32>
    %66 = math.exp %65 : vector<2x128xf32>
    %c0_42 = arith.constant 0 : index
    %c0_43 = arith.constant 0 : index
    %67 = vector.load %arg2[%c0_42, %c0_43] : memref<128x128xf32, #tpu.memory_space<vmem>>, vector<128x128xf32>
    %cst_44 = arith.constant dense<0.000000e+00> : vector<2x128xf32>
    %68 = tpu.matmul %66, %67, %cst_44 {dimension_numbers = #tpu.dot_dimension_numbers<[1], [0], [0], [1], [0, 0, 1, 1], [], []>} : vector<2x128xf32>, vector<128x128xf32>, vector<2x128xf32> -> vector<2x128xf32>
    %69 = math.log %68 : vector<2x128xf32>
    %70 = vector.broadcast %63 : vector<2x1xf32> to vector<2x128xf32>
    %71 = arith.addf %70, %69 : vector<2x128xf32>
    %cst_45 = arith.constant -1.000000e+30 : f32
    %72 = vector.broadcast %cst_45 : f32 to vector<2x128xf32>
    %73 = arith.maximumf %71, %72 : vector<2x128xf32>
    %74 = arith.addf %73, %60 : vector<2x128xf32>
    %c0_46 = arith.constant 0 : index
    %c0_47 = arith.constant 0 : index
    %75 = vector.load %arg6[%c0_46, %c0_47] : memref<2x128xf32, #tpu.memory_space<vmem>>, vector<2x128xf32>
    tpu.vector_store %arg6[%c0_46, %c0_47], %74 {strides = array<i32>} : memref<2x128xf32, #tpu.memory_space<vmem>>, vector<2x128xf32>,
    %c5 = arith.constant 5 : index
    %c0_48 = arith.constant 0 : index
    %c0_49 = arith.constant 0 : index
    %76 = vector.load %arg1[%c5, %c0_48, %c0_49] : memref<8x2x128xf32, #tpu.memory_space<vmem>>, vector<1x2x128xf32>
    %77 = vector.shape_cast %76 : vector<1x2x128xf32> to vector<2x128xf32>
    %c0_50 = arith.constant 0 : index
    %c0_51 = arith.constant 0 : index
    %78 = vector.load %arg6[%c0_50, %c0_51] : memref<2x128xf32, #tpu.memory_space<vmem>>, vector<2x128xf32>
    %cst_52 = arith.constant dense<0xFF800000> : vector<2xf32>
    %79 = vector.multi_reduction <maximumf>, %78, %cst_52 [1] : vector<2x128xf32> to vector<2xf32>
    %80 = vector.shape_cast %79 : vector<2xf32> to vector<2x1xf32>
    %81 = vector.broadcast %80 : vector<2x1xf32> to vector<2x128xf32>
    %82 = arith.subf %78, %81 : vector<2x128xf32>
    %83 = math.exp %82 : vector<2x128xf32>
    %c0_53 = arith.constant 0 : index
    %c0_54 = arith.constant 0 : index
    %84 = vector.load %arg2[%c0_53, %c0_54] : memref<128x128xf32, #tpu.memory_space<vmem>>, vector<128x128xf32>
    %cst_55 = arith.constant dense<0.000000e+00> : vector<2x128xf32>
    %85 = tpu.matmul %83, %84, %cst_55 {dimension_numbers = #tpu.dot_dimension_numbers<[1], [0], [0], [1], [0, 0, 1, 1], [], []>} : vector<2x128xf32>, vector<128x128xf32>, vector<2x128xf32> -> vector<2x128xf32>
    %86 = math.log %85 : vector<2x128xf32>
    %87 = vector.broadcast %80 : vector<2x1xf32> to vector<2x128xf32>
    %88 = arith.addf %87, %86 : vector<2x128xf32>
    %cst_56 = arith.constant -1.000000e+30 : f32
    %89 = vector.broadcast %cst_56 : f32 to vector<2x128xf32>
    %90 = arith.maximumf %88, %89 : vector<2x128xf32>
    %91 = arith.addf %90, %77 : vector<2x128xf32>
    %c0_57 = arith.constant 0 : index
    %c0_58 = arith.constant 0 : index
    %92 = vector.load %arg6[%c0_57, %c0_58] : memref<2x128xf32, #tpu.memory_space<vmem>>, vector<2x128xf32>
    tpu.vector_store %arg6[%c0_57, %c0_58], %91 {strides = array<i32>} : memref<2x128xf32, #tpu.memory_space<vmem>>, vector<2x128xf32>,
    %c6 = arith.constant 6 : index
    %c0_59 = arith.constant 0 : index
    %c0_60 = arith.constant 0 : index
    %93 = vector.load %arg1[%c6, %c0_59, %c0_60] : memref<8x2x128xf32, #tpu.memory_space<vmem>>, vector<1x2x128xf32>
    %94 = vector.shape_cast %93 : vector<1x2x128xf32> to vector<2x128xf32>
    %c0_61 = arith.constant 0 : index
    %c0_62 = arith.constant 0 : index
    %95 = vector.load %arg6[%c0_61, %c0_62] : memref<2x128xf32, #tpu.memory_space<vmem>>, vector<2x128xf32>
    %cst_63 = arith.constant dense<0xFF800000> : vector<2xf32>
    %96 = vector.multi_reduction <maximumf>, %95, %cst_63 [1] : vector<2x128xf32> to vector<2xf32>
    %97 = vector.shape_cast %96 : vector<2xf32> to vector<2x1xf32>
    %98 = vector.broadcast %97 : vector<2x1xf32> to vector<2x128xf32>
    %99 = arith.subf %95, %98 : vector<2x128xf32>
    %100 = math.exp %99 : vector<2x128xf32>
    %c0_64 = arith.constant 0 : index
    %c0_65 = arith.constant 0 : index
    %101 = vector.load %arg2[%c0_64, %c0_65] : memref<128x128xf32, #tpu.memory_space<vmem>>, vector<128x128xf32>
    %cst_66 = arith.constant dense<0.000000e+00> : vector<2x128xf32>
    %102 = tpu.matmul %100, %101, %cst_66 {dimension_numbers = #tpu.dot_dimension_numbers<[1], [0], [0], [1], [0, 0, 1, 1], [], []>} : vector<2x128xf32>, vector<128x128xf32>, vector<2x128xf32> -> vector<2x128xf32>
    %103 = math.log %102 : vector<2x128xf32>
    %104 = vector.broadcast %97 : vector<2x1xf32> to vector<2x128xf32>
    %105 = arith.addf %104, %103 : vector<2x128xf32>
    %cst_67 = arith.constant -1.000000e+30 : f32
    %106 = vector.broadcast %cst_67 : f32 to vector<2x128xf32>
    %107 = arith.maximumf %105, %106 : vector<2x128xf32>
    %108 = arith.addf %107, %94 : vector<2x128xf32>
    %c0_68 = arith.constant 0 : index
    %c0_69 = arith.constant 0 : index
    %109 = vector.load %arg6[%c0_68, %c0_69] : memref<2x128xf32, #tpu.memory_space<vmem>>, vector<2x128xf32>
    tpu.vector_store %arg6[%c0_68, %c0_69], %108 {strides = array<i32>} : memref<2x128xf32, #tpu.memory_space<vmem>>, vector<2x128xf32>,
    %c7 = arith.constant 7 : index
    %c0_70 = arith.constant 0 : index
    %c0_71 = arith.constant 0 : index
    %110 = vector.load %arg1[%c7, %c0_70, %c0_71] : memref<8x2x128xf32, #tpu.memory_space<vmem>>, vector<1x2x128xf32>
    %111 = vector.shape_cast %110 : vector<1x2x128xf32> to vector<2x128xf32>
    %c0_72 = arith.constant 0 : index
    %c0_73 = arith.constant 0 : index
    %112 = vector.load %arg6[%c0_72, %c0_73] : memref<2x128xf32, #tpu.memory_space<vmem>>, vector<2x128xf32>
    %cst_74 = arith.constant dense<0xFF800000> : vector<2xf32>
    %113 = vector.multi_reduction <maximumf>, %112, %cst_74 [1] : vector<2x128xf32> to vector<2xf32>
    %114 = vector.shape_cast %113 : vector<2xf32> to vector<2x1xf32>
    %115 = vector.broadcast %114 : vector<2x1xf32> to vector<2x128xf32>
    %116 = arith.subf %112, %115 : vector<2x128xf32>
    %117 = math.exp %116 : vector<2x128xf32>
    %c0_75 = arith.constant 0 : index
    %c0_76 = arith.constant 0 : index
    %118 = vector.load %arg2[%c0_75, %c0_76] : memref<128x128xf32, #tpu.memory_space<vmem>>, vector<128x128xf32>
    %cst_77 = arith.constant dense<0.000000e+00> : vector<2x128xf32>
    %119 = tpu.matmul %117, %118, %cst_77 {dimension_numbers = #tpu.dot_dimension_numbers<[1], [0], [0], [1], [0, 0, 1, 1], [], []>} : vector<2x128xf32>, vector<128x128xf32>, vector<2x128xf32> -> vector<2x128xf32>
    %120 = math.log %119 : vector<2x128xf32>
    %121 = vector.broadcast %114 : vector<2x1xf32> to vector<2x128xf32>
    %122 = arith.addf %121, %120 : vector<2x128xf32>
    %cst_78 = arith.constant -1.000000e+30 : f32
    %123 = vector.broadcast %cst_78 : f32 to vector<2x128xf32>
    %124 = arith.maximumf %122, %123 : vector<2x128xf32>
    %125 = arith.addf %124, %111 : vector<2x128xf32>
    %c0_79 = arith.constant 0 : index
    %c0_80 = arith.constant 0 : index
    %126 = vector.load %arg6[%c0_79, %c0_80] : memref<2x128xf32, #tpu.memory_space<vmem>>, vector<2x128xf32>
    tpu.vector_store %arg6[%c0_79, %c0_80], %125 {strides = array<i32>} : memref<2x128xf32, #tpu.memory_space<vmem>>, vector<2x128xf32>,
    %c0_i32_81 = arith.constant 0 : i32
    %127 = arith.cmpi eq, %arg0, %c0_i32_81 : i32
    %128 = arith.extui %127 : i1 to i32
    %c0_i32_82 = arith.constant 0 : i32
    %129 = arith.cmpi ne, %128, %c0_i32_82 : i32
    scf.if %129 {
      %c0_83 = arith.constant 0 : index
      %c0_84 = arith.constant 0 : index
      %130 = vector.load %arg6[%c0_83, %c0_84] : memref<2x128xf32, #tpu.memory_space<vmem>>, vector<2x128xf32>
      %c0_85 = arith.constant 0 : index
      %c0_86 = arith.constant 0 : index
      %131 = vector.load %arg4[%c0_85, %c0_86] : memref<1x128xf32, #tpu.memory_space<vmem>>, vector<1x128xf32>
      %132 = vector.broadcast %131 : vector<1x128xf32> to vector<2x128xf32>
      %133 = arith.addf %130, %132 : vector<2x128xf32>
      %cst_87 = arith.constant dense<0xFF800000> : vector<2xf32>
      %134 = vector.multi_reduction <maximumf>, %133, %cst_87 [1] : vector<2x128xf32> to vector<2xf32>
      %135 = vector.shape_cast %134 : vector<2xf32> to vector<2x1xf32>
      %136 = vector.broadcast %135 : vector<2x1xf32> to vector<2x128xf32>
      %137 = arith.subf %133, %136 : vector<2x128xf32>
      %138 = math.exp %137 : vector<2x128xf32>
      %cst_88 = arith.constant dense<0.000000e+00> : vector<2xf32>
      %139 = vector.multi_reduction <add>, %138, %cst_88 [1] : vector<2x128xf32> to vector<2xf32>
      %140 = vector.shape_cast %139 : vector<2xf32> to vector<2x1xf32>
      %141 = math.log %140 : vector<2x1xf32>
      %142 = arith.addf %135, %141 : vector<2x1xf32>
      %c0_89 = arith.constant 0 : index
      %c0_90 = arith.constant 0 : index
      %143 = vector.load %arg5[%c0_89, %c0_90] : memref<2x1xf32, #tpu.memory_space<vmem>>, vector<2x1xf32>
      tpu.vector_store %arg5[%c0_89, %c0_90], %142 {strides = array<i32>} : memref<2x1xf32, #tpu.memory_space<vmem>>, vector<2x1xf32>,
    } else {
    }
    return
  }
  func.func @transform_0(%arg0: i32) -> (i32, i32, i32) {
    %c0_i32 = arith.constant 0 : i32
    %c0_i32_0 = arith.constant 0 : i32
    %c0_i32_1 = arith.constant 0 : i32
    return %arg0, %c0_i32, %c0_i32_0 : i32, i32, i32
  }
  func.func @transform_1(%arg0: i32) -> (i32, i32) {
    %c0_i32 = arith.constant 0 : i32
    %c0_i32_0 = arith.constant 0 : i32
    %c0_i32_1 = arith.constant 0 : i32
    return %c0_i32, %c0_i32_0 : i32, i32
  }
  func.func @transform_2(%arg0: i32) -> (i32, i32) {
    %c0_i32 = arith.constant 0 : i32
    %c0_i32_0 = arith.constant 0 : i32
    %c0_i32_1 = arith.constant 0 : i32
    return %c0_i32, %c0_i32_0 : i32, i32
  }
  func.func @transform_3(%arg0: i32) -> (i32, i32) {
    %c0_i32 = arith.constant 0 : i32
    %c0_i32_0 = arith.constant 0 : i32
    %c0_i32_1 = arith.constant 0 : i32
    return %c0_i32, %c0_i32_0 : i32, i32
  }
  func.func @transform_4(%arg0: i32) -> (i32, i32) {
    %c0_i32 = arith.constant 0 : i32
    %c0_i32_0 = arith.constant 0 : i32
    %c0_i32_1 = arith.constant 0 : i32
    return %c0_i32, %c0_i32_0 : i32, i32
  }
}

</mosaic_0001>

<bundles_post_ra>
// kernel: lstm_crf_forward.4
= control target key start
LH: loop header
LB: loop body
LE: loop exit
PB: predicated region body
PF: predicated region fallthrough
CT: control target
= control target key end

     0   :  { %v117_v0 = vmov 0.0   ;;  %vm118_vm0 = vmmov 0   ;;  %vm45_vm1 = vcmask 261120   ;;  %s157_s1 = inlined_call_operand.vmem [shape: bf16[32,128], index: 1, kind: input, shape index: {}]   ;;  %s158_s0 = inlined_call_operand.vmem [shape: bf16[16,32], index: 0, kind: input, shape index: {}]   ;;  %s159_s2 = inlined_call_operand.vmem [shape: f32[1,128], index: 2, kind: input, shape index: {}]   ;;  %s160_s3 = inlined_call_operand.vmem [shape: f32[16,128], index: 3, kind: output, shape index: {}]  }
   0x1   :  { %104 = vmatprep.subr.bf16.mxu0 %v117_v0  ;;  %v114_v1 = vld [vmem:[%s157_s1] sm:$0xff]   ;;  %108 = vmatprep.mubr.msk.bf16.mxu0 %vm118_vm0, %v117_v0  ;;  %v115_v2 = vld [vmem:[%s157_s1 + $0x8] sm:$0xff]  }
   0x2   :  { %105 = vmatpush3.bf16.msra.mxu0 %v114_v1  ;;  %v116_v3 = vld [vmem:[%s158_s0] sm:$0xff]  }
   0x3   :  { %106 = vmatprep.subr.bf16.mxu0 %v117_v0  ;;  %v96_v4 = vld [vmem:[%s159_s2] ss:$0 sm:$0xff] }
   0x6   :  { %107 = vmatpush3.bf16.msra.mxu0 %v115_v2 }
   0x9   :  { %109 = vmatmul.mubr.msk.bf16.vlgmr.msra.gmra.mrb[0].mxu0 %vm45_vm1, %v116_v3 }
  0xdc   :  { %v83_v5 = vpop.f32.mrb[0].mxu0 }
  0xdd   :  { %v84_v6 = vadd.f32 %v96_v4, %v83_v5  ;;  %v110_v7 = vpop.f32.mrb[1].mxu0 }
  0xde   :  { %v86_v8 = vpop.f32.mrb[2].mxu0 }
  0xdf   :  { %90 = vst [vmem:[%s160_s3] sm:$0xff] %v84_v6  ;;  %v87_v9 = vadd.f32 %v96_v4, %v86_v8  ;;  %v111_v10 = vpop.f32.mrb[3].mxu0 }
  0xe1   :  { %91 = vst [vmem:[%s160_s3 + $0x8] sm:$0xff] %v87_v9 }

// kernel: lstm_crf_forward.5
= control target key start
LH: loop header
LB: loop body
LE: loop exit
PB: predicated region body
PF: predicated region fallthrough
CT: control target
= control target key end

     0   :  { %s1283_s9 = smov 0   ;;  %s1285_s10 = smov 0   ;;  %s1465_s0 = inlined_call_operand.vmem [shape: f32[2,8,2,64], index: 0, kind: input, shape index: {}]   ;;  %s1466_s1 = inlined_call_operand.vmem [shape: bf16[2,16,64], index: 1, kind: input, shape index: {}]   ;;  %s1467_s2 = inlined_call_operand.vmem [shape: f32[2,8,2,16], index: 2, kind: output, shape index: {}]  }
   0x1   :  { %s1287_s11 = smov 0  }
   0x2 LB: > { %s24_s12 = sadd.s32 1, %s1255_s10  ;;  %p1034_p0 = scmp.ge.s32.totalorder %s1259_s11, 1  ;;  %s1259_s11 = sphi %s1287_s11, %s12_s11   ;;  %s1255_s10 = sphi %s1285_s10, %s1469_s10   ;;  %s1251_s9 = sphi %s1283_s9, %s1468_s9  }
   0x3   : > { %p26_p1 = scmp.ge.s32.totalorder %s24_s12, 2  ;;  %p143_p2 = scmp.lt.s32.totalorder %s1259_s11, 3 }
   0x5   : > { %s1471_s12 = smov (%p26_p1, %s24_s12), 0  ;;  %p144_p3 = pnand %p1034_p0, %p143_p2 }
   0x6   : > { %p179_p4 = scmp.lt.s32.totalorder (!%p144_p3), %s1251_s9, 1  ;;  %vm208_vm0 = vcmask (!%p144_p3), 123904   ;;  %v1261_v0 = vmov (!%p144_p3), 0.0   ;;  %vm1262_vm1 = vmmov (!%p144_p3), 0   ;;  %vm222_vm2 = vcmask (!%p144_p3), 130048   ;;  %s1263_s21 = smov (!%p144_p3), 96  }
   0x7   : > { %147 = sbr.rel (%p144_p3) target bundleno = 5708 (0x164c), region = 28  ;;  %1093 = vmatprep.subr.bf16.mxu0 (!%p144_p3), %v1261_v0  ;;  %1095 = vmatprep.mubr.msk.bf16.mxu0 (!%p144_p3), %vm1262_vm1, %v1261_v0  ;;  %209 = vst.msk [vmem:[#allocation2] sm:$0x3] (!%p144_p3), %vm208_vm0, %v1261_v0  ;;  %210 = vst.msk [vmem:[#allocation3] sm:$0x3] (!%p144_p3), %vm208_vm0, %v1261_v0  ;;  %s1264_s22 = smov (!%p144_p3), 16  }
   0x8   : > { %1099 = vmatprep.subr.bf16.mxu1 (!%p144_p3), %v1261_v0  ;;  %1101 = vmatprep.mubr.msk.bf16.mxu1 (!%p144_p3), %vm1262_vm1, %v1261_v0  ;;  %s1265_s23 = smov (!%p144_p3), 32   ;;  %s1266_s24 = smov (!%p144_p3), 112  }
   0x9   : > { %s1267_s25 = smov (!%p144_p3), 80  }
   0xe   : > { %s1473_s9 = smov (!%p179_p4, %s1251_s9), 1  ;;  %v214_v2 = vld [vmem:[#allocation2] sm:$0x3]  ;;  %v274_v11 = vld [vmem:[#allocation3] sm:$0x3] }
   0xf   : > { %s1075_s13 = sshll.u32 %s1473_s9, 3  ;;  %v215_v3 = vpack.c.bf16 %v214_v2, %v214_v2  ;;  %s1074_s17 = sshll.u32 %s1473_s9, 4 }
  0x10   : > { %s192_s16 = scalar_lea.vmem %s1466_s1, %s1075_s13  ;;  %s1334_s20 = scalar_lea.vmem %s1465_s0, %s1074_s17 }
  0x11   : > { %v1317_v1 = vld [vmem:[%s192_s16] sm:$0xff]   ;;  %s1350_s28 = scalar_lea.vmem %s1467_s2, %s1074_s17 }
  0x12   : > { %1094 = vmatpush3.bf16.msra.mxu0 %v1317_v1  ;;  %1100 = vmatpush3.bf16.msra.mxu1 %v1317_v1  ;;  %v213_v4 = vld [vmem:[%s1334_s20] sm:$0x3]  ;;  %v1044_v30 = vld [vmem:[%s1334_s20 + $0x2] sm:$0x3]  ;;  %v1048_v55 = vld [vmem:[%s1334_s20 + $0x4] sm:$0x3] }
  0x13   : > { %1105 = vmatprep.subr.bf16.mxu0 %v1261_v0  ;;  %1111 = vmatprep.subr.bf16.mxu1 %v1261_v0 }
  0x15   : > { %1096 = vmatmul.mubr.msk.bf16.vlgmr.msra.gmra.mrb[0].mxu0 %vm222_vm2, %v215_v3 }
  0x16   : > { %1106 = vmatpush3.bf16.msra.mxu0 %v1317_v1  ;;  %1107 = vmatprep.mubr.msk.bf16.mxu0 %vm1262_vm1, %v1261_v0 }
  0x17   : > { %1117 = vmatprep.subr.bf16.mxu0 %v1261_v0 }
  0xe8   : > { %v260_v5 = vpop.f32.mrb[0].mxu0 }
  0xe9   : > { %v266_v6 = vadd.f32 %v260_v5, %v213_v4  ;;  %v1097_v7 = vpop.f32.mrb[1].mxu0 }
  0xea   : > { %v263_v8 = vpop.f32.mrb[2].mxu0 }
  0xeb   : > { %1173 = vtanh.f32 %v266_v6  ;;  %v1098_v9 = vpop.f32.mrb[3].mxu0  ;;  %v1043_v12 = vmul.f32 -1.442695, %v266_v6 }
  0xed   : > { %1175 = vpow2.f32 %v1043_v12 }
  0xf5   : > { %v1174_v10 = vpop.eup %1173 }
  0xf6   : > { %281 = vrot.lane.b32.xlu0 %v1174_v10, %s1263_s21 }
  0xf7   : > { %v1176_v13 = vpop.eup %1175 }
  0xf8   : > { %v270_v14 = vadd.f32 1.0, %v1176_v13 }
  0xfa   : > { %276 = vrot.lane.b32.xlu0 %v274_v11, %s1264_s22  ;;  %1177 = vrcp.f32 %v270_v14 }
 0x104   : > { %v1178_v15 = vpop.eup %1177 }
 0x168   : > { %v282_v16 = vpop.permute.xlu0 %281 }
 0x169   : > { %v284_v17 = vmul.f32 %v1178_v15, %v282_v16 }
 0x16b   : > { %286 = vrot.lane.b32.xlu1 %v284_v17, %s1264_s22 }
 0x16c   : > { %v277_v18 = vpop.permute.xlu0 %276 }
 0x16d   : > { %v279_v19 = vmul.f32 %v1178_v15, %v277_v18  ;;  %v1052_v18 = vld [vmem:[%s1334_s20 + $0x6] sm:$0x3] }
 0x1dd   : > { %v287_v20 = vpop.permute.xlu1 %286 }
 0x1de   : > { %v289_v21 = vadd.f32 %v287_v20, %v279_v19 }
 0x1e0   : > { %1179 = vtanh.f32 %v289_v21 }
 0x1ea   : > { %v1180_v22 = vpop.eup %1179 }
 0x1eb   : > { %292 = vrot.lane.b32.xlu1 %v1180_v22, %s1265_s23 }
 0x1ef   : > { %297 = vrot.lane.b32.xlu1 %v289_v21, %s1266_s24 }
 0x25d   : > { %v293_v23 = vpop.permute.xlu1 %292 }
 0x25e   : > { %v295_v24 = vmul.f32 %v1178_v15, %v293_v23 }
 0x260   : > { %303 = vrot.lane.b32.xlu0 %v295_v24, %s1267_s25 }
 0x261   : > { %v298_v25 = vpop.permute.xlu1 %297 }
 0x262   : > { %301 = vst.msk [vmem:[#allocation3] sm:$0x3] %vm208_vm0, %v298_v25 }
 0x269   : > { %v363_v26 = vld [vmem:[#allocation3] sm:$0x3] }
 0x26a   : > { %365 = vrot.lane.b32.xlu1 %v363_v26, %s1264_s22 }
 0x2d2   : > { %v304_v27 = vpop.permute.xlu0 %303 }
 0x2d3   : > { %306 = vst.msk [vmem:[#allocation2] sm:$0x3] %vm208_vm0, %v304_v27  ;;  %307 = vst.msk [vmem:[%s1350_s28] sm:$0x3] %vm208_vm0, %v304_v27 }
 0x2da   : > { %v310_v28 = vld [vmem:[#allocation2] sm:$0x3] }
 0x2db   : > { %v311_v29 = vpack.c.bf16 %v310_v28, %v310_v28 }
 0x2dc   : > { %v366_v43 = vpop.permute.xlu1 %365 }
 0x2dd   : > { %1102 = vmatmul.mubr.msk.bf16.vlgmr.msra.gmra.mrb[0].mxu1 %vm222_vm2, %v311_v29 }
 0x2de   : > { %1112 = vmatpush3.bf16.msra.mxu1 %v1317_v1  ;;  %1113 = vmatprep.mubr.msk.bf16.mxu1 %vm1262_vm1, %v1261_v0 }
 0x2df   : > { %1123 = vmatprep.subr.bf16.mxu1 %v1261_v0 }
 0x3b0   : > { %v349_v31 = vpop.f32.mrb[0].mxu1 }
 0x3b1   : > { %v355_v32 = vadd.f32 %v1044_v30, %v349_v31  ;;  %v1103_v33 = vpop.f32.mrb[1].mxu1 }
 0x3b2   : > { %v352_v34 = vpop.f32.mrb[2].mxu1 }
 0x3b3   : > { %1181 = vtanh.f32 %v355_v32  ;;  %v1104_v35 = vpop.f32.mrb[3].mxu1  ;;  %v1046_v37 = vmul.f32 -1.442695, %v355_v32 }
 0x3b5   : > { %1183 = vpow2.f32 %v1046_v37 }
 0x3bd   : > { %v1182_v36 = vpop.eup %1181 }
 0x3be   : > { %370 = vrot.lane.b32.xlu0 %v1182_v36, %s1263_s21 }
 0x3bf   : > { %v1184_v38 = vpop.eup %1183 }
 0x3c0   : > { %v359_v39 = vadd.f32 1.0, %v1184_v38 }
 0x3c2   : > { %1185 = vrcp.f32 %v359_v39 }
 0x3cc   : > { %v1186_v40 = vpop.eup %1185 }
 0x3cd   : > { %v368_v44 = vmul.f32 %v1186_v40, %v366_v43  ;;  %v1056_v43 = vld [vmem:[%s1334_s20 + $0x8] sm:$0x3] }
 0x430   : > { %v371_v41 = vpop.permute.xlu0 %370 }
 0x431   : > { %v373_v42 = vmul.f32 %v1186_v40, %v371_v41 }
 0x433   : > { %375 = vrot.lane.b32.xlu0 %v373_v42, %s1264_s22 }
 0x4a5   : > { %v376_v45 = vpop.permute.xlu0 %375 }
 0x4a6   : > { %v378_v46 = vadd.f32 %v376_v45, %v368_v44 }
 0x4a8   : > { %1187 = vtanh.f32 %v378_v46 }
 0x4b2   : > { %v1188_v47 = vpop.eup %1187 }
 0x4b3   : > { %381 = vrot.lane.b32.xlu1 %v1188_v47, %s1265_s23 }
 0x4b7   : > { %386 = vrot.lane.b32.xlu1 %v378_v46, %s1266_s24 }
 0x525   : > { %v382_v48 = vpop.permute.xlu1 %381 }
 0x526   : > { %v384_v49 = vmul.f32 %v1186_v40, %v382_v48 }
 0x528   : > { %391 = vrot.lane.b32.xlu0 %v384_v49, %s1267_s25 }
 0x529   : > { %v387_v50 = vpop.permute.xlu1 %386 }
 0x52a   : > { %389 = vst.msk [vmem:[#allocation3] sm:$0x3] %vm208_vm0, %v387_v50 }
 0x531   : > { %v452_v51 = vld [vmem:[#allocation3] sm:$0x3] }
 0x532   : > { %454 = vrot.lane.b32.xlu1 %v452_v51, %s1264_s22 }
 0x59a   : > { %v392_v52 = vpop.permute.xlu0 %391 }
 0x59b   : > { %394 = vst.msk [vmem:[#allocation2] sm:$0x3] %vm208_vm0, %v392_v52  ;;  %1047 = vst.msk [vmem:[%s1350_s28 + $0x2] sm:$0x3] %vm208_vm0, %v392_v52 }
 0x5a2   : > { %v399_v53 = vld [vmem:[#allocation2] sm:$0x3] }
 0x5a3   : > { %v400_v54 = vpack.c.bf16 %v399_v53, %v399_v53 }
 0x5a4   : > { %v455_v6 = vpop.permute.xlu1 %454 }
 0x5a5   : > { %1108 = vmatmul.mubr.msk.bf16.vlgmr.msra.gmra.mrb[4].mxu0 %vm222_vm2, %v400_v54 }
 0x5a6   : > { %1118 = vmatpush3.bf16.msra.mxu0 %v1317_v1  ;;  %1119 = vmatprep.mubr.msk.bf16.mxu0 %vm1262_vm1, %v1261_v0 }
 0x5a7   : > { %1129 = vmatprep.subr.bf16.mxu0 %v1261_v0 }
 0x678   : > { %v438_v56 = vpop.f32.mrb[4].mxu0 }
 0x679   : > { %v444_v57 = vadd.f32 %v1048_v55, %v438_v56  ;;  %v1109_v58 = vpop.f32.mrb[5].mxu0 }
 0x67a   : > { %v441_v59 = vpop.f32.mrb[6].mxu0 }
 0x67b   : > { %1189 = vtanh.f32 %v444_v57  ;;  %v1110_v60 = vpop.f32.mrb[7].mxu0  ;;  %v1050_v62 = vmul.f32 -1.442695, %v444_v57 }
 0x67d   : > { %1191 = vpow2.f32 %v1050_v62 }
 0x685   : > { %v1190_v61 = vpop.eup %1189 }
 0x686   : > { %459 = vrot.lane.b32.xlu0 %v1190_v61, %s1263_s21 }
 0x687   : > { %v1192_v63 = vpop.eup %1191 }
 0x688   : > { %v448_v2 = vadd.f32 1.0, %v1192_v63 }
 0x68a   : > { %1193 = vrcp.f32 %v448_v2 }
 0x694   : > { %v1194_v3 = vpop.eup %1193 }
 0x695   : > { %v457_v7 = vmul.f32 %v1194_v3, %v455_v6  ;;  %v1060_v6 = vld [vmem:[%s1334_s20 + $0xa] sm:$0x3] }
 0x6f8   : > { %v460_v4 = vpop.permute.xlu0 %459 }
 0x6f9   : > { %v462_v5 = vmul.f32 %v1194_v3, %v460_v4 }
 0x6fb   : > { %464 = vrot.lane.b32.xlu0 %v462_v5, %s1264_s22 }
 0x76d   : > { %v465_v8 = vpop.permute.xlu0 %464 }
 0x76e   : > { %v467_v9 = vadd.f32 %v465_v8, %v457_v7 }
 0x770   : > { %1195 = vtanh.f32 %v467_v9 }
 0x77a   : > { %v1196_v10 = vpop.eup %1195 }
 0x77b   : > { %470 = vrot.lane.b32.xlu1 %v1196_v10, %s1265_s23 }
 0x77f   : > { %475 = vrot.lane.b32.xlu1 %v467_v9, %s1266_s24 }
 0x7ed   : > { %v471_v11 = vpop.permute.xlu1 %470 }
 0x7ee   : > { %v473_v12 = vmul.f32 %v1194_v3, %v471_v11 }
 0x7f0   : > { %480 = vrot.lane.b32.xlu0 %v473_v12, %s1267_s25 }
 0x7f1   : > { %v476_v13 = vpop.permute.xlu1 %475 }
 0x7f2   : > { %478 = vst.msk [vmem:[#allocation3] sm:$0x3] %vm208_vm0, %v476_v13 }
 0x7f9   : > { %v541_v14 = vld [vmem:[#allocation3] sm:$0x3] }
 0x7fa   : > { %543 = vrot.lane.b32.xlu1 %v541_v14, %s1264_s22 }
 0x862   : > { %v481_v15 = vpop.permute.xlu0 %480 }
 0x863   : > { %483 = vst.msk [vmem:[#allocation2] sm:$0x3] %vm208_vm0, %v481_v15  ;;  %1051 = vst.msk [vmem:[%s1350_s28 + $0x4] sm:$0x3] %vm208_vm0, %v481_v15 }
 0x86a   : > { %v488_v16 = vld [vmem:[#allocation2] sm:$0x3] }
 0x86b   : > { %v489_v17 = vpack.c.bf16 %v488_v16, %v488_v16 }
 0x86c   : > { %v544_v31 = vpop.permute.xlu1 %543 }
 0x86d   : > { %1114 = vmatmul.mubr.msk.bf16.vlgmr.msra.gmra.mrb[4].mxu1 %vm222_vm2, %v489_v17 }
 0x86e   : > { %1124 = vmatpush3.bf16.msra.mxu1 %v1317_v1  ;;  %1125 = vmatprep.mubr.msk.bf16.mxu1 %vm1262_vm1, %v1261_v0 }
 0x86f   : > { %1135 = vmatprep.subr.bf16.mxu1 %v1261_v0 }
 0x940   : > { %v527_v19 = vpop.f32.mrb[4].mxu1 }
 0x941   : > { %v533_v20 = vadd.f32 %v1052_v18, %v527_v19  ;;  %v1115_v21 = vpop.f32.mrb[5].mxu1 }
 0x942   : > { %v530_v22 = vpop.f32.mrb[6].mxu1 }
 0x943   : > { %1197 = vtanh.f32 %v533_v20  ;;  %v1116_v23 = vpop.f32.mrb[7].mxu1  ;;  %v1054_v25 = vmul.f32 -1.442695, %v533_v20 }
 0x945   : > { %1199 = vpow2.f32 %v1054_v25 }
 0x94d   : > { %v1198_v24 = vpop.eup %1197 }
 0x94e   : > { %548 = vrot.lane.b32.xlu0 %v1198_v24, %s1263_s21 }
 0x94f   : > { %v1200_v26 = vpop.eup %1199 }
 0x950   : > { %v537_v27 = vadd.f32 1.0, %v1200_v26 }
 0x952   : > { %1201 = vrcp.f32 %v537_v27 }
 0x95c   : > { %v1202_v28 = vpop.eup %1201 }
 0x95d   : > { %v546_v32 = vmul.f32 %v1202_v28, %v544_v31 }
 0x9c0   : > { %v549_v29 = vpop.permute.xlu0 %548 }
 0x9c1   : > { %v551_v30 = vmul.f32 %v1202_v28, %v549_v29  ;;  %v1064_v29 = vld [vmem:[%s1334_s20 + $0xc] sm:$0x3] }
 0x9c3   : > { %553 = vrot.lane.b32.xlu0 %v551_v30, %s1264_s22 }
 0xa35   : > { %v554_v33 = vpop.permute.xlu0 %553 }
 0xa36   : > { %v556_v34 = vadd.f32 %v554_v33, %v546_v32 }
 0xa38   : > { %1203 = vtanh.f32 %v556_v34 }
 0xa42   : > { %v1204_v35 = vpop.eup %1203 }
 0xa43   : > { %559 = vrot.lane.b32.xlu1 %v1204_v35, %s1265_s23 }
 0xa47   : > { %564 = vrot.lane.b32.xlu1 %v556_v34, %s1266_s24 }
 0xab5   : > { %v560_v36 = vpop.permute.xlu1 %559 }
 0xab6   : > { %v562_v37 = vmul.f32 %v1202_v28, %v560_v36 }
 0xab8   : > { %569 = vrot.lane.b32.xlu0 %v562_v37, %s1267_s25 }
 0xab9   : > { %v565_v38 = vpop.permute.xlu1 %564 }
 0xaba   : > { %567 = vst.msk [vmem:[#allocation3] sm:$0x3] %vm208_vm0, %v565_v38 }
 0xac1   : > { %v630_v39 = vld [vmem:[#allocation3] sm:$0x3] }
 0xac2   : > { %632 = vrot.lane.b32.xlu1 %v630_v39, %s1264_s22 }
 0xb2a   : > { %v570_v40 = vpop.permute.xlu0 %569 }
 0xb2b   : > { %572 = vst.msk [vmem:[#allocation2] sm:$0x3] %vm208_vm0, %v570_v40  ;;  %1055 = vst.msk [vmem:[%s1350_s28 + $0x6] sm:$0x3] %vm208_vm0, %v570_v40 }
 0xb32   : > { %v577_v41 = vld [vmem:[#allocation2] sm:$0x3] }
 0xb33   : > { %v578_v42 = vpack.c.bf16 %v577_v41, %v577_v41 }
 0xb34   : > { %v633_v56 = vpop.permute.xlu1 %632 }
 0xb35   : > { %1120 = vmatmul.mubr.msk.bf16.vlgmr.msra.gmra.mrb[8].mxu0 %vm222_vm2, %v578_v42 }
 0xb36   : > { %1130 = vmatpush3.bf16.msra.mxu0 %v1317_v1  ;;  %1131 = vmatprep.mubr.msk.bf16.mxu0 %vm1262_vm1, %v1261_v0 }
 0xc08   : > { %v616_v44 = vpop.f32.mrb[8].mxu0 }
 0xc09   : > { %v622_v45 = vadd.f32 %v1056_v43, %v616_v44  ;;  %v1121_v46 = vpop.f32.mrb[9].mxu0 }
 0xc0a   : > { %v619_v47 = vpop.f32.mrb[10].mxu0 }
 0xc0b   : > { %1205 = vtanh.f32 %v622_v45  ;;  %v1122_v48 = vpop.f32.mrb[11].mxu0  ;;  %v1058_v50 = vmul.f32 -1.442695, %v622_v45 }
 0xc0d   : > { %1207 = vpow2.f32 %v1058_v50 }
 0xc15   : > { %v1206_v49 = vpop.eup %1205 }
 0xc16   : > { %637 = vrot.lane.b32.xlu0 %v1206_v49, %s1263_s21 }
 0xc17   : > { %v1208_v51 = vpop.eup %1207 }
 0xc18   : > { %v626_v52 = vadd.f32 1.0, %v1208_v51 }
 0xc1a   : > { %1209 = vrcp.f32 %v626_v52 }
 0xc24   : > { %v1210_v53 = vpop.eup %1209 }
 0xc25   : > { %v635_v57 = vmul.f32 %v1210_v53, %v633_v56 }
 0xc88   : > { %v638_v54 = vpop.permute.xlu0 %637 }
 0xc89   : > { %v640_v55 = vmul.f32 %v1210_v53, %v638_v54  ;;  %v1068_v54 = vld [vmem:[%s1334_s20 + $0xe] sm:$0x3] }
 0xc8b   : > { %642 = vrot.lane.b32.xlu0 %v640_v55, %s1264_s22 }
 0xcfd   : > { %v643_v58 = vpop.permute.xlu0 %642 }
 0xcfe   : > { %v645_v59 = vadd.f32 %v643_v58, %v635_v57 }
 0xd00   : > { %1211 = vtanh.f32 %v645_v59 }
 0xd0a   : > { %v1212_v60 = vpop.eup %1211 }
 0xd0b   : > { %648 = vrot.lane.b32.xlu1 %v1212_v60, %s1265_s23 }
 0xd0f   : > { %653 = vrot.lane.b32.xlu1 %v645_v59, %s1266_s24 }
 0xd7d   : > { %v649_v61 = vpop.permute.xlu1 %648 }
 0xd7e   : > { %v651_v62 = vmul.f32 %v1210_v53, %v649_v61 }
 0xd80   : > { %658 = vrot.lane.b32.xlu0 %v651_v62, %s1267_s25 }
 0xd81   : > { %v654_v63 = vpop.permute.xlu1 %653 }
 0xd82   : > { %656 = vst.msk [vmem:[#allocation3] sm:$0x3] %vm208_vm0, %v654_v63 }
 0xd89   : > { %v719_v2 = vld [vmem:[#allocation3] sm:$0x3] }
 0xd8a   : > { %721 = vrot.lane.b32.xlu1 %v719_v2, %s1264_s22 }
 0xdf2   : > { %v659_v3 = vpop.permute.xlu0 %658 }
 0xdf3   : > { %661 = vst.msk [vmem:[#allocation2] sm:$0x3] %vm208_vm0, %v659_v3  ;;  %1059 = vst.msk [vmem:[%s1350_s28 + $0x8] sm:$0x3] %vm208_vm0, %v659_v3 }
 0xdfa   : > { %v666_v4 = vld [vmem:[#allocation2] sm:$0x3] }
 0xdfb   : > { %v667_v5 = vpack.c.bf16 %v666_v4, %v666_v4 }
 0xdfd   : > { %1126 = vmatmul.mubr.msk.bf16.vlgmr.msra.gmra.mrb[8].mxu1 %vm222_vm2, %v667_v5 }
 0xdfe   : > { %1136 = vmatpush3.bf16.msra.mxu1 %v1317_v1  ;;  %1137 = vmatprep.mubr.msk.bf16.mxu1 %vm1262_vm1, %v1261_v0  ;;  %v722_v0 = vpop.permute.xlu1 %721 }
 0xed0   : > { %v705_v7 = vpop.f32.mrb[8].mxu1 }
 0xed1   : > { %v711_v8 = vadd.f32 %v1060_v6, %v705_v7  ;;  %v1127_v9 = vpop.f32.mrb[9].mxu1 }
 0xed2   : > { %v708_v10 = vpop.f32.mrb[10].mxu1 }
 0xed3   : > { %1213 = vtanh.f32 %v711_v8  ;;  %v1128_v11 = vpop.f32.mrb[11].mxu1  ;;  %v1062_v13 = vmul.f32 -1.442695, %v711_v8 }
 0xed5   : > { %1215 = vpow2.f32 %v1062_v13 }
 0xedd   : > { %v1214_v12 = vpop.eup %1213 }
 0xede   : > { %726 = vrot.lane.b32.xlu0 %v1214_v12, %s1263_s21 }
 0xedf   : > { %v1216_v14 = vpop.eup %1215 }
 0xee0   : > { %v715_v15 = vadd.f32 1.0, %v1216_v14 }
 0xee2   : > { %1217 = vrcp.f32 %v715_v15 }
 0xeec   : > { %v1218_v16 = vpop.eup %1217 }
 0xeed   : > { %v724_v18 = vmul.f32 %v1218_v16, %v722_v0 }
 0xf50   : > { %v727_v1 = vpop.permute.xlu0 %726 }
 0xf51   : > { %v729_v17 = vmul.f32 %v1218_v16, %v727_v1 }
 0xf53   : > { %731 = vrot.lane.b32.xlu0 %v729_v17, %s1264_s22 }
 0xfc5   : > { %v732_v19 = vpop.permute.xlu0 %731 }
 0xfc6   : > { %v734_v20 = vadd.f32 %v732_v19, %v724_v18 }
 0xfc8   : > { %1219 = vtanh.f32 %v734_v20 }
 0xfd2   : > { %v1220_v21 = vpop.eup %1219 }
 0xfd3   : > { %737 = vrot.lane.b32.xlu1 %v1220_v21, %s1265_s23 }
 0xfd7   : > { %742 = vrot.lane.b32.xlu1 %v734_v20, %s1266_s24 }
0x1045   : > { %v738_v22 = vpop.permute.xlu1 %737 }
0x1046   : > { %v740_v23 = vmul.f32 %v1218_v16, %v738_v22 }
0x1048   : > { %747 = vrot.lane.b32.xlu0 %v740_v23, %s1267_s25 }
0x1049   : > { %v743_v24 = vpop.permute.xlu1 %742 }
0x104a   : > { %745 = vst.msk [vmem:[#allocation3] sm:$0x3] %vm208_vm0, %v743_v24 }
0x1051   : > { %v808_v25 = vld [vmem:[#allocation3] sm:$0x3] }
0x1052   : > { %810 = vrot.lane.b32.xlu1 %v808_v25, %s1264_s22 }
0x10ba   : > { %v748_v26 = vpop.permute.xlu0 %747 }
0x10bb   : > { %750 = vst.msk [vmem:[#allocation2] sm:$0x3] %vm208_vm0, %v748_v26  ;;  %1063 = vst.msk [vmem:[%s1350_s28 + $0xa] sm:$0x3] %vm208_vm0, %v748_v26 }
0x10c2   : > { %v755_v27 = vld [vmem:[#allocation2] sm:$0x3] }
0x10c3   : > { %v756_v28 = vpack.c.bf16 %v755_v27, %v755_v27 }
0x10c4   : > { %v811_v42 = vpop.permute.xlu1 %810 }
0x10c5   : > { %1132 = vmatmul.mubr.msk.bf16.vlgmr.msra.gmra.mrb[12].mxu0 %vm222_vm2, %v756_v28 }
0x1198   : > { %v794_v30 = vpop.f32.mrb[12].mxu0 }
0x1199   : > { %v800_v31 = vadd.f32 %v1064_v29, %v794_v30  ;;  %v1133_v32 = vpop.f32.mrb[13].mxu0 }
0x119a   : > { %v797_v33 = vpop.f32.mrb[14].mxu0 }
0x119b   : > { %1221 = vtanh.f32 %v800_v31  ;;  %v1134_v34 = vpop.f32.mrb[15].mxu0  ;;  %v1066_v36 = vmul.f32 -1.442695, %v800_v31 }
0x119d   : > { %1223 = vpow2.f32 %v1066_v36 }
0x11a5   : > { %v1222_v35 = vpop.eup %1221 }
0x11a6   : > { %815 = vrot.lane.b32.xlu0 %v1222_v35, %s1263_s21 }
0x11a7   : > { %v1224_v37 = vpop.eup %1223 }
0x11a8   : > { %v804_v38 = vadd.f32 1.0, %v1224_v37 }
0x11aa   : > { %1225 = vrcp.f32 %v804_v38 }
0x11b4   : > { %v1226_v39 = vpop.eup %1225 }
0x11b5   : > { %v813_v43 = vmul.f32 %v1226_v39, %v811_v42 }
0x1218   : > { %v816_v40 = vpop.permute.xlu0 %815 }
0x1219   : > { %v818_v41 = vmul.f32 %v1226_v39, %v816_v40 }
0x121b   : > { %820 = vrot.lane.b32.xlu0 %v818_v41, %s1264_s22 }
0x128d   : > { %v821_v44 = vpop.permute.xlu0 %820 }
0x128e   : > { %v823_v45 = vadd.f32 %v821_v44, %v813_v43 }
0x1290   : > { %1227 = vtanh.f32 %v823_v45 }
0x129a   : > { %v1228_v46 = vpop.eup %1227 }
0x129b   : > { %826 = vrot.lane.b32.xlu1 %v1228_v46, %s1265_s23 }
0x129f   : > { %831 = vrot.lane.b32.xlu1 %v823_v45, %s1266_s24 }
0x130d   : > { %v827_v47 = vpop.permute.xlu1 %826 }
0x130e   : > { %v829_v48 = vmul.f32 %v1226_v39, %v827_v47 }
0x1310   : > { %836 = vrot.lane.b32.xlu0 %v829_v48, %s1267_s25 }
0x1311   : > { %v832_v49 = vpop.permute.xlu1 %831 }
0x1312   : > { %834 = vst.msk [vmem:[#allocation3] sm:$0x3] %vm208_vm0, %v832_v49 }
0x1319   : > { %v897_v50 = vld [vmem:[#allocation3] sm:$0x3] }
0x131a   : > { %899 = vrot.lane.b32.xlu1 %v897_v50, %s1264_s22 }
0x1382   : > { %v837_v51 = vpop.permute.xlu0 %836 }
0x1383   : > { %839 = vst.msk [vmem:[#allocation2] sm:$0x3] %vm208_vm0, %v837_v51  ;;  %1067 = vst.msk [vmem:[%s1350_s28 + $0xc] sm:$0x3] %vm208_vm0, %v837_v51 }
0x138a   : > { %v844_v52 = vld [vmem:[#allocation2] sm:$0x3] }
0x138b   : > { %v845_v53 = vpack.c.bf16 %v844_v52, %v844_v52 }
0x138c   : > { %v900_v5 = vpop.permute.xlu1 %899 }
0x138d   : > { %1138 = vmatmul.mubr.msk.bf16.vlgmr.msra.gmra.mrb[12].mxu1 %vm222_vm2, %v845_v53 }
0x1460   : > { %v883_v55 = vpop.f32.mrb[12].mxu1 }
0x1461   : > { %v889_v56 = vadd.f32 %v1068_v54, %v883_v55  ;;  %v1139_v57 = vpop.f32.mrb[13].mxu1 }
0x1462   : > { %v886_v58 = vpop.f32.mrb[14].mxu1 }
0x1463   : > { %1229 = vtanh.f32 %v889_v56  ;;  %v1140_v59 = vpop.f32.mrb[15].mxu1  ;;  %v1070_v61 = vmul.f32 -1.442695, %v889_v56 }
0x1465   : > { %1231 = vpow2.f32 %v1070_v61 }
0x146d   : > { %v1230_v60 = vpop.eup %1229 }
0x146e   : > { %904 = vrot.lane.b32.xlu0 %v1230_v60, %s1263_s21 }
0x146f   : > { %v1232_v62 = vpop.eup %1231 }
0x1470   : > { %v893_v63 = vadd.f32 1.0, %v1232_v62 }
0x1472   : > { %1233 = vrcp.f32 %v893_v63 }
0x147c   : > { %v1234_v2 = vpop.eup %1233 }
0x147d   : > { %v902_v6 = vmul.f32 %v1234_v2, %v900_v5 }
0x14e0   : > { %v905_v3 = vpop.permute.xlu0 %904 }
0x14e1   : > { %v907_v4 = vmul.f32 %v1234_v2, %v905_v3 }
0x14e3   : > { %909 = vrot.lane.b32.xlu0 %v907_v4, %s1264_s22 }
0x1555   : > { %v910_v7 = vpop.permute.xlu0 %909 }
0x1556   : > { %v912_v8 = vadd.f32 %v910_v7, %v902_v6 }
0x1558   : > { %1235 = vtanh.f32 %v912_v8  ;;  %920 = vrot.lane.b32.xlu0 %v912_v8, %s1266_s24 }
0x1562   : > { %v1236_v9 = vpop.eup %1235 }
0x1563   : > { %915 = vrot.lane.b32.xlu1 %v1236_v9, %s1265_s23 }
0x15ca   : > { %v921_v10 = vpop.permute.xlu0 %920 }
0x15cb   : > { %923 = vst.msk [vmem:[#allocation3] sm:$0x3] %vm208_vm0, %v921_v10 }
0x15d5   : > { %v916_v11 = vpop.permute.xlu1 %915 }
0x15d6   : > { %v918_v12 = vmul.f32 %v1234_v2, %v916_v11 }
0x15d8   : > { %925 = vrot.lane.b32.xlu1 %v918_v12, %s1267_s25 }
0x164a   : > { %v926_v13 = vpop.permute.xlu1 %925 }
0x164b   : > { %928 = vst.msk [vmem:[#allocation2] sm:$0x3] %vm208_vm0, %v926_v13  ;;  %1071 = vst.msk [vmem:[%s1350_s28 + $0xe] sm:$0x3] %vm208_vm0, %v926_v13 }
0x164c PF: > { %s12_s11 = sadd.s32 1, %s1259_s11   ;;  %s1468_s9 = smov %s1255_s10 }
0x164d   : > { %p9_p5 = scmp.ge.s32.totalorder %s12_s11, 4   ;;  %s1469_s10 = smov %s1471_s12 }
0x164f   :  { %11 = sbr.rel (!%p9_p5) target bundleno = 2 (0x2), region = 79 }

// kernel: custom-call.13
= control target key start
LH: loop header
LB: loop body
LE: loop exit
PB: predicated region body
PF: predicated region fallthrough
CT: control target
= control target key end

     0   :  { %s6_s0 = inlined_call_operand.vmem [shape: s32[7,2,9], index: 0, kind: output, shape index: {}]  }

// kernel: lstm_crf_forward.7
= control target key start
LH: loop header
LB: loop body
LE: loop exit
PB: predicated region body
PF: predicated region fallthrough
CT: control target
= control target key end

     0   :  { %v1449_v2 = vmov 0.0|0.0   ;;  %vm138_vm0 = vcmask 1041408   ;;  %vm1450_vm1 = vmmov 0   ;;  %v1451_v29 = vmov 0.0   ;;  %s1709_s0 = inlined_call_operand.vmem [shape: f32[8,2,128], index: 0, kind: input, shape index: {}]   ;;  %s1710_s2 = inlined_call_operand.vmem [shape: f32[1,128], index: 2, kind: input, shape index: {}]   ;;  %s1711_s1 = inlined_call_operand.vmem [shape: f32[128,128], index: 1, kind: input, shape index: {}]   ;;  %s1712_s3 = inlined_call_operand.vmem [shape: f32[1,128], index: 3, kind: input, shape index: {}]   ;;  %s1713_s4 = inlined_call_operand.vmem [shape: f32[2,1], index: 4, kind: output, shape index: {}]  }
   0x1   :  { %v17_v0 = vld [vmem:[%s1709_s0] sm:$0x3]  ;;  %1246 = vmatprep.subr.bf16.mxu0 %v1449_v2  ;;  %1270 = vmatprep.subr.bf16.mxu1 %v1449_v2  ;;  %v146_v5 = vld [vmem:[%s1711_s1 + $0x8] sm:$0xff]  ;;  %v147_v6 = vld [vmem:[%s1711_s1 + $0x10] sm:$0xff]  ;;  %vm867_vm2 = vcmask 1024  }
   0x2   :  { %v873_v1 = vld [vmem:[%s1710_s2] ss:$0 sm:$0xff]  ;;  %v148_v7 = vld [vmem:[%s1711_s1 + $0x18] sm:$0xff]  ;;  %v150_v11 = vld [vmem:[%s1711_s1 + $0x28] sm:$0xff]  ;;  %1033 = vmatprep.mubr.msk.f32.mxu0 %vm1450_vm1, %v1451_v29  ;;  %1068 = vmatprep.mubr.msk.f32.mxu1 %vm1450_vm1, %v1451_v29 }
   0x3   :  { %v145_v3 = vld [vmem:[%s1711_s1] sm:$0xff]  ;;  %v29_v4 = vadd.f32 %v873_v1, %v17_v0  ;;  %v1500_v9 = vpack.c.bf16 %v148_v7, %v147_v6  ;;  %v151_v13 = vld [vmem:[%s1711_s1 + $0x30] sm:$0xff]  ;;  %v152_v14 = vld [vmem:[%s1711_s1 + $0x38] sm:$0xff] }
   0x4   :  { %v1497_v8 = vpack.c.bf16 %v146_v5, %v145_v3  ;;  %v149_v10 = vld [vmem:[%s1711_s1 + $0x20] sm:$0xff]  ;;  %v1525_v17 = vpack.c.bf16 %v152_v14, %v151_v13  ;;  %v154_v19 = vld [vmem:[%s1711_s1 + $0x48] sm:$0xff]  ;;  %v155_v21 = vld [vmem:[%s1711_s1 + $0x50] sm:$0xff] }
   0x5   :  { %30 = vst [vmem:[#allocation2] sm:$0x3] %v29_v4  ;;  %v1512_v12 = vpack.c.bf16 %v150_v11, %v149_v10  ;;  %v153_v18 = vld [vmem:[%s1711_s1 + $0x40] sm:$0xff]  ;;  %v156_v22 = vld [vmem:[%s1711_s1 + $0x58] sm:$0xff]  ;;  %v158_v25 = vld [vmem:[%s1711_s1 + $0x68] sm:$0xff] }
   0x6   :  { %1248 = vmatpush3.bf16.msra.mxu0 %v1497_v8  ;;  %1272 = vmatpush3.bf16.msra.mxu1 %v1497_v8  ;;  %v1540_v20 = vpack.c.bf16 %v154_v19, %v153_v18  ;;  %v1552_v23 = vpack.c.bf16 %v156_v22, %v155_v21  ;;  %v157_v24 = vld [vmem:[%s1711_s1 + $0x60] sm:$0xff]  ;;  %v159_v27 = vld [vmem:[%s1711_s1 + $0x70] sm:$0xff]  ;;  %v160_v28 = vld [vmem:[%s1711_s1 + $0x78] sm:$0xff] }
   0x7   :  { %1249 = vmatprep.subr.bf16.mxu0 %v1449_v2  ;;  %1273 = vmatprep.subr.bf16.mxu1 %v1449_v2  ;;  %v1563_v26 = vpack.c.bf16 %v158_v25, %v157_v24  ;;  %v1577_v30 = vpack.c.bf16 %v160_v28, %v159_v27  ;;  %v874_v40 = vld [vmem:[%s1709_s0 + $0x2] sm:$0x3]  ;;  %v875_v54 = vld [vmem:[%s1709_s0 + $0x4] sm:$0x3]  ;;  %v876_v5 = vld [vmem:[%s1709_s0 + $0x6] sm:$0x3] }
   0x8   :  { %v877_v25 = vld [vmem:[%s1709_s0 + $0x8] sm:$0x3] }
   0xa   :  { %1251 = vmatpush3.bf16.msra.mxu0 %v1500_v9  ;;  %1275 = vmatpush3.bf16.msra.mxu1 %v1500_v9 }
   0xb   :  { %1252 = vmatprep.subr.bf16.mxu0 %v1449_v2  ;;  %1276 = vmatprep.subr.bf16.mxu1 %v1449_v2 }
   0xc   :  { %v137_v15 = vld [vmem:[#allocation2] sm:$0x3] }
   0xd   :  { %v139_v16 = vsel %vm138_vm0, %v137_v15, -inf }
   0xe   :  { %140 = vmax.xlane.f32.xlu0 %v139_v16  ;;  %1254 = vmatpush3.bf16.msra.mxu0 %v1512_v12 }
   0xf   :  { %1255 = vmatprep.subr.bf16.mxu0 %v1449_v2  ;;  %1278 = vmatpush3.bf16.msra.mxu1 %v1512_v12 }
  0x10   :  { %1279 = vmatprep.subr.bf16.mxu1 %v1449_v2 }
  0x12   :  { %1257 = vmatpush3.bf16.msra.mxu0 %v1525_v17 }
  0x13   :  { %1258 = vmatprep.subr.bf16.mxu0 %v1449_v2  ;;  %1281 = vmatpush3.bf16.msra.mxu1 %v1525_v17 }
  0x14   :  { %1282 = vmatprep.subr.bf16.mxu1 %v1449_v2 }
  0x16   :  { %1260 = vmatpush3.bf16.msra.mxu0 %v1540_v20 }
  0x17   :  { %1284 = vmatpush3.bf16.msra.mxu1 %v1540_v20  ;;  %1261 = vmatprep.subr.bf16.mxu0 %v1449_v2 }
  0x18   :  { %1285 = vmatprep.subr.bf16.mxu1 %v1449_v2 }
  0x1a   :  { %1263 = vmatpush3.bf16.msra.mxu0 %v1552_v23 }
  0x1b   :  { %1287 = vmatpush3.bf16.msra.mxu1 %v1552_v23  ;;  %1264 = vmatprep.subr.bf16.mxu0 %v1449_v2 }
  0x1c   :  { %1288 = vmatprep.subr.bf16.mxu1 %v1449_v2 }
  0x1e   :  { %1266 = vmatpush3.bf16.msra.mxu0 %v1563_v26 }
  0x1f   :  { %1290 = vmatpush3.bf16.msra.mxu1 %v1563_v26  ;;  %1267 = vmatprep.subr.bf16.mxu0 %v1449_v2 }
  0x20   :  { %1291 = vmatprep.subr.bf16.mxu1 %v1449_v2 }
  0x22   :  { %1269 = vmatpush3.bf16.msra.mxu0 %v1577_v30 }
  0x23   :  { %1293 = vmatpush3.bf16.msra.mxu1 %v1577_v30  ;;  %1294 = vmatprep.subr.bf16.mxu0 %v1449_v2 }
  0x24   :  { %1318 = vmatprep.subr.bf16.mxu1 %v1449_v2 }
  0x9b   :  { %v141_v31 = vpop.xlane.xlu0 %140 }
  0x9c   :  { %v142_v32 = vsub.f32 %v137_v15, %v141_v31 }
  0x9e   :  { %v143_v33 = vmul.f32 1.442695, %v142_v32 }
  0xa0   :  { %1417 = vpow2.f32 %v143_v33 }
  0xaa   :  { %v1418_v34 = vpop.eup %1417 }
  0xab   :  { %1034 = vmatmul.mubr.f32.vlgmr.msra.gmra.mrb[0].mxu0 %v1418_v34 }
  0xac   :  { %1296 = vmatpush3.bf16.msra.mxu0 %v1497_v8  ;;  %1103 = vmatprep.mubr.msk.f32.mxu0 %vm1450_vm1, %v1451_v29 }
  0xad   :  { %1297 = vmatprep.subr.bf16.mxu0 %v1449_v2 }
  0xb0   :  { %1299 = vmatpush3.bf16.msra.mxu0 %v1500_v9 }
  0xb1   :  { %1300 = vmatprep.subr.bf16.mxu0 %v1449_v2 }
  0xb4   :  { %1302 = vmatpush3.bf16.msra.mxu0 %v1512_v12 }
  0xb5   :  { %1303 = vmatprep.subr.bf16.mxu0 %v1449_v2 }
  0xb8   :  { %1305 = vmatpush3.bf16.msra.mxu0 %v1525_v17 }
  0xb9   :  { %1306 = vmatprep.subr.bf16.mxu0 %v1449_v2 }
  0xbc   :  { %1308 = vmatpush3.bf16.msra.mxu0 %v1540_v20 }
  0xbd   :  { %1309 = vmatprep.subr.bf16.mxu0 %v1449_v2 }
  0xc0   :  { %1311 = vmatpush3.bf16.msra.mxu0 %v1552_v23 }
  0xc1   :  { %1312 = vmatprep.subr.bf16.mxu0 %v1449_v2 }
  0xc4   :  { %1314 = vmatpush3.bf16.msra.mxu0 %v1563_v26 }
  0xc5   :  { %1315 = vmatprep.subr.bf16.mxu0 %v1449_v2 }
  0xc8   :  { %1317 = vmatpush3.bf16.msra.mxu0 %v1577_v30 }
  0xc9   :  { %1342 = vmatprep.subr.bf16.mxu0 %v1449_v2 }
 0x17e   :  { %v227_v35 = vpop.f32.mrb[0].mxu0 }
 0x17f   :  { %1419 = vlog2.f32 %v227_v35  ;;  %v1035_v36 = vpop.f32.mrb[1].mxu0 }
 0x189   :  { %v1420_v37 = vpop.eup %1419 }
 0x18a   :  { %v232_v38 = vmul.f32 0.6931472, %v1420_v37 }
 0x18c   :  { %v233_v39 = vadd.f32 %v232_v38, %v141_v31 }
 0x18e   :  { %v234_v41 = vmax.f32 %v233_v39, -1e+30 }
 0x190   :  { %v235_v42 = vadd.f32 %v874_v40, %v234_v41 }
 0x192   :  { %236 = vst [vmem:[#allocation2] sm:$0x3] %v235_v42 }
 0x199   :  { %v239_v43 = vld [vmem:[#allocation2] sm:$0x3] }
 0x19a   :  { %v240_v44 = vsel %vm138_vm0, %v239_v43, -inf }
 0x19b   :  { %241 = vmax.xlane.f32.xlu0 %v240_v44 }
 0x228   :  { %v242_v45 = vpop.xlane.xlu0 %241 }
 0x229   :  { %v243_v46 = vsub.f32 %v239_v43, %v242_v45 }
 0x22b   :  { %v244_v47 = vmul.f32 1.442695, %v243_v46  ;;  %v879_v46 = vld [vmem:[%s1709_s0 + $0xc] sm:$0x3] }
 0x22d   :  { %1421 = vpow2.f32 %v244_v47 }
 0x237   :  { %v1422_v48 = vpop.eup %1421 }
 0x238   :  { %1069 = vmatmul.mubr.f32.vlgmr.msra.gmra.mrb[0].mxu1 %v1422_v48 }
 0x239   :  { %1320 = vmatpush3.bf16.msra.mxu1 %v1497_v8  ;;  %1138 = vmatprep.mubr.msk.f32.mxu1 %vm1450_vm1, %v1451_v29 }
 0x23a   :  { %1321 = vmatprep.subr.bf16.mxu1 %v1449_v2 }
 0x23d   :  { %1323 = vmatpush3.bf16.msra.mxu1 %v1500_v9 }
 0x23e   :  { %1324 = vmatprep.subr.bf16.mxu1 %v1449_v2 }
 0x241   :  { %1326 = vmatpush3.bf16.msra.mxu1 %v1512_v12 }
 0x242   :  { %1327 = vmatprep.subr.bf16.mxu1 %v1449_v2 }
 0x245   :  { %1329 = vmatpush3.bf16.msra.mxu1 %v1525_v17 }
 0x246   :  { %1330 = vmatprep.subr.bf16.mxu1 %v1449_v2 }
 0x249   :  { %1332 = vmatpush3.bf16.msra.mxu1 %v1540_v20 }
 0x24a   :  { %1333 = vmatprep.subr.bf16.mxu1 %v1449_v2 }
 0x24d   :  { %1335 = vmatpush3.bf16.msra.mxu1 %v1552_v23 }
 0x24e   :  { %1336 = vmatprep.subr.bf16.mxu1 %v1449_v2 }
 0x251   :  { %1338 = vmatpush3.bf16.msra.mxu1 %v1563_v26 }
 0x252   :  { %1339 = vmatprep.subr.bf16.mxu1 %v1449_v2 }
 0x255   :  { %1341 = vmatpush3.bf16.msra.mxu1 %v1577_v30 }
 0x256   :  { %1366 = vmatprep.subr.bf16.mxu1 %v1449_v2 }
 0x30b   :  { %v328_v49 = vpop.f32.mrb[0].mxu1 }
 0x30c   :  { %1423 = vlog2.f32 %v328_v49  ;;  %v1070_v50 = vpop.f32.mrb[1].mxu1 }
 0x316   :  { %v1424_v51 = vpop.eup %1423 }
 0x317   :  { %v333_v52 = vmul.f32 0.6931472, %v1424_v51 }
 0x319   :  { %v334_v53 = vadd.f32 %v333_v52, %v242_v45 }
 0x31b   :  { %v335_v55 = vmax.f32 %v334_v53, -1e+30 }
 0x31d   :  { %v336_v56 = vadd.f32 %v875_v54, %v335_v55 }
 0x31f   :  { %337 = vst [vmem:[#allocation2] sm:$0x3] %v336_v56 }
 0x326   :  { %v340_v57 = vld [vmem:[#allocation2] sm:$0x3] }
 0x327   :  { %v341_v58 = vsel %vm138_vm0, %v340_v57, -inf }
 0x328   :  { %342 = vmax.xlane.f32.xlu1 %v341_v58 }
 0x3b5   :  { %v343_v59 = vpop.xlane.xlu1 %342 }
 0x3b6   :  { %v344_v60 = vsub.f32 %v340_v57, %v343_v59 }
 0x3b8   :  { %v345_v61 = vmul.f32 1.442695, %v344_v60  ;;  %v880_v60 = vld [vmem:[%s1709_s0 + $0xe] sm:$0x3] }
 0x3ba   :  { %1425 = vpow2.f32 %v345_v61 }
 0x3c4   :  { %v1426_v62 = vpop.eup %1425 }
 0x3c5   :  { %1104 = vmatmul.mubr.f32.vlgmr.msra.gmra.mrb[2].mxu0 %v1426_v62 }
 0x3c6   :  { %1344 = vmatpush3.bf16.msra.mxu0 %v1497_v8  ;;  %1173 = vmatprep.mubr.msk.f32.mxu0 %vm1450_vm1, %v1451_v29 }
 0x3c7   :  { %1345 = vmatprep.subr.bf16.mxu0 %v1449_v2 }
 0x3ca   :  { %1347 = vmatpush3.bf16.msra.mxu0 %v1500_v9 }
 0x3cb   :  { %1348 = vmatprep.subr.bf16.mxu0 %v1449_v2 }
 0x3ce   :  { %1350 = vmatpush3.bf16.msra.mxu0 %v1512_v12 }
 0x3cf   :  { %1351 = vmatprep.subr.bf16.mxu0 %v1449_v2 }
 0x3d2   :  { %1353 = vmatpush3.bf16.msra.mxu0 %v1525_v17 }
 0x3d3   :  { %1354 = vmatprep.subr.bf16.mxu0 %v1449_v2 }
 0x3d6   :  { %1356 = vmatpush3.bf16.msra.mxu0 %v1540_v20 }
 0x3d7   :  { %1357 = vmatprep.subr.bf16.mxu0 %v1449_v2 }
 0x3da   :  { %1359 = vmatpush3.bf16.msra.mxu0 %v1552_v23 }
 0x3db   :  { %1360 = vmatprep.subr.bf16.mxu0 %v1449_v2 }
 0x3de   :  { %1362 = vmatpush3.bf16.msra.mxu0 %v1563_v26 }
 0x3df   :  { %1363 = vmatprep.subr.bf16.mxu0 %v1449_v2 }
 0x3e2   :  { %1365 = vmatpush3.bf16.msra.mxu0 %v1577_v30 }
 0x3e3   :  { %1390 = vmatprep.subr.bf16.mxu0 %v1449_v2 }
 0x498   :  { %v429_v63 = vpop.f32.mrb[2].mxu0 }
 0x499   :  { %1427 = vlog2.f32 %v429_v63  ;;  %v1105_v0 = vpop.f32.mrb[3].mxu0  ;;  %v881_v63 = vld [vmem:[%s1712_s3] ss:$0 sm:$0xff] }
 0x4a3   :  { %v1428_v1 = vpop.eup %1427 }
 0x4a4   :  { %v434_v3 = vmul.f32 0.6931472, %v1428_v1 }
 0x4a6   :  { %v435_v4 = vadd.f32 %v434_v3, %v343_v59 }
 0x4a8   :  { %v436_v6 = vmax.f32 %v435_v4, -1e+30 }
 0x4aa   :  { %v437_v7 = vadd.f32 %v876_v5, %v436_v6 }
 0x4ac   :  { %438 = vst [vmem:[#allocation2] sm:$0x3] %v437_v7 }
 0x4b3   :  { %v441_v10 = vld [vmem:[#allocation2] sm:$0x3] }
 0x4b4   :  { %v442_v11 = vsel %vm138_vm0, %v441_v10, -inf }
 0x4b5   :  { %443 = vmax.xlane.f32.xlu1 %v442_v11 }
 0x542   :  { %v444_v13 = vpop.xlane.xlu1 %443 }
 0x543   :  { %v445_v14 = vsub.f32 %v441_v10, %v444_v13 }
 0x545   :  { %v446_v15 = vmul.f32 1.442695, %v445_v14 }
 0x547   :  { %1429 = vpow2.f32 %v446_v15 }
 0x551   :  { %v1430_v16 = vpop.eup %1429 }
 0x552   :  { %1139 = vmatmul.mubr.f32.vlgmr.msra.gmra.mrb[2].mxu1 %v1430_v16 }
 0x553   :  { %1368 = vmatpush3.bf16.msra.mxu1 %v1497_v8  ;;  %1208 = vmatprep.mubr.msk.f32.mxu1 %vm1450_vm1, %v1451_v29 }
 0x554   :  { %1369 = vmatprep.subr.bf16.mxu1 %v1449_v2 }
 0x557   :  { %1371 = vmatpush3.bf16.msra.mxu1 %v1500_v9 }
 0x558   :  { %1372 = vmatprep.subr.bf16.mxu1 %v1449_v2 }
 0x55b   :  { %1374 = vmatpush3.bf16.msra.mxu1 %v1512_v12 }
 0x55c   :  { %1375 = vmatprep.subr.bf16.mxu1 %v1449_v2 }
 0x55f   :  { %1377 = vmatpush3.bf16.msra.mxu1 %v1525_v17 }
 0x560   :  { %1378 = vmatprep.subr.bf16.mxu1 %v1449_v2 }
 0x563   :  { %1380 = vmatpush3.bf16.msra.mxu1 %v1540_v20 }
 0x564   :  { %1381 = vmatprep.subr.bf16.mxu1 %v1449_v2 }
 0x567   :  { %1383 = vmatpush3.bf16.msra.mxu1 %v1552_v23 }
 0x568   :  { %1384 = vmatprep.subr.bf16.mxu1 %v1449_v2 }
 0x56b   :  { %1386 = vmatpush3.bf16.msra.mxu1 %v1563_v26 }
 0x56c   :  { %1387 = vmatprep.subr.bf16.mxu1 %v1449_v2 }
 0x56f   :  { %1389 = vmatpush3.bf16.msra.mxu1 %v1577_v30 }
 0x625   :  { %v530_v18 = vpop.f32.mrb[2].mxu1 }
 0x626   :  { %1431 = vlog2.f32 %v530_v18  ;;  %v1140_v19 = vpop.f32.mrb[3].mxu1 }
 0x630   :  { %v1432_v21 = vpop.eup %1431 }
 0x631   :  { %v535_v22 = vmul.f32 0.6931472, %v1432_v21 }
 0x633   :  { %v536_v24 = vadd.f32 %v535_v22, %v444_v13 }
 0x635   :  { %v537_v27 = vmax.f32 %v536_v24, -1e+30 }
 0x637   :  { %v538_v28 = vadd.f32 %v877_v25, %v537_v27 }
 0x639   :  { %539 = vst [vmem:[#allocation2] sm:$0x3] %v538_v28 }
 0x640   :  { %v542_v31 = vld [vmem:[#allocation2] sm:$0x3] }
 0x641   :  { %v543_v32 = vsel %vm138_vm0, %v542_v31, -inf }
 0x642   :  { %544 = vmax.xlane.f32.xlu0 %v543_v32 }
 0x6cf   :  { %v545_v33 = vpop.xlane.xlu0 %544 }
 0x6d0   :  { %v546_v34 = vsub.f32 %v542_v31, %v545_v33 }
 0x6d2   :  { %v547_v35 = vmul.f32 1.442695, %v546_v34 }
 0x6d4   :  { %1433 = vpow2.f32 %v547_v35 }
 0x6de   :  { %v1434_v36 = vpop.eup %1433 }
 0x6df   :  { %1174 = vmatmul.mubr.f32.vlgmr.msra.gmra.mrb[4].mxu0 %v1434_v36 }
 0x6e0   :  { %1392 = vmatpush3.bf16.msra.mxu0 %v1497_v8  ;;  %1243 = vmatprep.mubr.msk.f32.mxu0 %vm1450_vm1, %v1451_v29 }
 0x6e1   :  { %1393 = vmatprep.subr.bf16.mxu0 %v1449_v2 }
 0x6e4   :  { %1395 = vmatpush3.bf16.msra.mxu0 %v1500_v9 }
 0x6e5   :  { %1396 = vmatprep.subr.bf16.mxu0 %v1449_v2 }
 0x6e8   :  { %1398 = vmatpush3.bf16.msra.mxu0 %v1512_v12 }
 0x6e9   :  { %1399 = vmatprep.subr.bf16.mxu0 %v1449_v2 }
 0x6ec   :  { %1401 = vmatpush3.bf16.msra.mxu0 %v1525_v17 }
 0x6ed   :  { %1402 = vmatprep.subr.bf16.mxu0 %v1449_v2 }
 0x6f0   :  { %1404 = vmatpush3.bf16.msra.mxu0 %v1540_v20  ;;  %v878_v20 = vld [vmem:[%s1709_s0 + $0xa] sm:$0x3] }
 0x6f1   :  { %1405 = vmatprep.subr.bf16.mxu0 %v1449_v2 }
 0x6f4   :  { %1407 = vmatpush3.bf16.msra.mxu0 %v1552_v23 }
 0x6f5   :  { %1408 = vmatprep.subr.bf16.mxu0 %v1449_v2 }
 0x6f8   :  { %1410 = vmatpush3.bf16.msra.mxu0 %v1563_v26 }
 0x6f9   :  { %1411 = vmatprep.subr.bf16.mxu0 %v1449_v2 }
 0x6fc   :  { %1413 = vmatpush3.bf16.msra.mxu0 %v1577_v30 }
 0x7b2   :  { %v631_v8 = vpop.f32.mrb[4].mxu0 }
 0x7b3   :  { %1435 = vlog2.f32 %v631_v8  ;;  %v1175_v9 = vpop.f32.mrb[5].mxu0 }
 0x7bd   :  { %v1436_v12 = vpop.eup %1435 }
 0x7be   :  { %v636_v17 = vmul.f32 0.6931472, %v1436_v12 }
 0x7c0   :  { %v637_v29 = vadd.f32 %v636_v17, %v545_v33 }
 0x7c2   :  { %v638_v37 = vmax.f32 %v637_v29, -1e+30 }
 0x7c4   :  { %v639_v23 = vadd.f32 %v878_v20, %v638_v37 }
 0x7c6   :  { %640 = vst [vmem:[#allocation2] sm:$0x3] %v639_v23 }
 0x7cd   :  { %v643_v38 = vld [vmem:[#allocation2] sm:$0x3] }
 0x7ce   :  { %v644_v26 = vsel %vm138_vm0, %v643_v38, -inf }
 0x7cf   :  { %645 = vmax.xlane.f32.xlu1 %v644_v26 }
 0x85c   :  { %v646_v2 = vpop.xlane.xlu1 %645 }
 0x85d   :  { %v647_v39 = vsub.f32 %v643_v38, %v646_v2 }
 0x85f   :  { %v648_v30 = vmul.f32 1.442695, %v647_v39 }
 0x861   :  { %1437 = vpow2.f32 %v648_v30 }
 0x86b   :  { %v1438_v40 = vpop.eup %1437 }
 0x86c   :  { %1209 = vmatmul.mubr.f32.vlgmr.msra.gmra.mrb[4].mxu1 %v1438_v40 }
 0x93f   :  { %v732_v41 = vpop.f32.mrb[4].mxu1 }
 0x940   :  { %1439 = vlog2.f32 %v732_v41  ;;  %v1210_v42 = vpop.f32.mrb[5].mxu1 }
 0x94a   :  { %v1440_v43 = vpop.eup %1439 }
 0x94b   :  { %v737_v44 = vmul.f32 0.6931472, %v1440_v43 }
 0x94d   :  { %v738_v45 = vadd.f32 %v737_v44, %v646_v2 }
 0x94f   :  { %v739_v47 = vmax.f32 %v738_v45, -1e+30 }
 0x951   :  { %v740_v48 = vadd.f32 %v879_v46, %v739_v47 }
 0x953   :  { %741 = vst [vmem:[#allocation2] sm:$0x3] %v740_v48 }
 0x95a   :  { %v744_v49 = vld [vmem:[#allocation2] sm:$0x3] }
 0x95b   :  { %v745_v50 = vsel %vm138_vm0, %v744_v49, -inf }
 0x95c   :  { %746 = vmax.xlane.f32.xlu0 %v745_v50 }
 0x9e9   :  { %v747_v51 = vpop.xlane.xlu0 %746 }
 0x9ea   :  { %v748_v52 = vsub.f32 %v744_v49, %v747_v51 }
 0x9ec   :  { %v749_v53 = vmul.f32 1.442695, %v748_v52 }
 0x9ee   :  { %1441 = vpow2.f32 %v749_v53 }
 0x9f8   :  { %v1442_v54 = vpop.eup %1441 }
 0x9f9   :  { %1244 = vmatmul.mubr.f32.vlgmr.msra.gmra.mrb[6].mxu0 %v1442_v54 }
 0xacc   :  { %v833_v55 = vpop.f32.mrb[6].mxu0 }
 0xacd   :  { %1443 = vlog2.f32 %v833_v55  ;;  %v1245_v56 = vpop.f32.mrb[7].mxu0 }
 0xad7   :  { %v1444_v57 = vpop.eup %1443 }
 0xad8   :  { %v838_v58 = vmul.f32 0.6931472, %v1444_v57 }
 0xada   :  { %v839_v59 = vadd.f32 %v838_v58, %v747_v51 }
 0xadc   :  { %v840_v61 = vmax.f32 %v839_v59, -1e+30 }
 0xade   :  { %v841_v62 = vadd.f32 %v880_v60, %v840_v61 }
 0xae0   :  { %842 = vst [vmem:[#allocation2] sm:$0x3] %v841_v62 }
 0xae7   :  { %v846_v0 = vld [vmem:[#allocation2] sm:$0x3] }
 0xae8   :  { %v854_v1 = vadd.f32 %v881_v63, %v846_v0 }
 0xaea   :  { %v855_v3 = vsel %vm138_vm0, %v854_v1, -inf }
 0xaeb   :  { %856 = vmax.xlane.f32.xlu1 %v855_v3 }
 0xb78   :  { %v857_v4 = vpop.xlane.xlu1 %856 }
 0xb79   :  { %v858_v5 = vsub.f32 %v854_v1, %v857_v4 }
 0xb7b   :  { %v859_v6 = vmul.f32 1.442695, %v858_v5 }
 0xb7d   :  { %1445 = vpow2.f32 %v859_v6 }
 0xb87   :  { %v1446_v7 = vpop.eup %1445 }
 0xb88   :  { %v861_v10 = vsel %vm138_vm0, %v1446_v7, 0.0 }
 0xb89   :  { %862 = vadd.xlane.f32.xlu0 %v861_v10 }
 0xc16   :  { %v863_v11 = vpop.xlane.xlu0 %862 }
 0xc17   :  { %1447 = vlog2.f32 %v863_v11 }
 0xc21   :  { %v1448_v13 = vpop.eup %1447 }
 0xc22   :  { %v865_v14 = vmul.f32 0.6931472, %v1448_v13 }
 0xc24   :  { %v866_v15 = vadd.f32 %v865_v14, %v857_v4 }
 0xc26   :  { %868 = vst.msk [vmem:[%s1713_s4] sm:$0x3] %vm867_vm2, %v866_v15 }

</bundles_post_ra>
